<compile_context>
chip_gen: v7x
topology: tpu7x:2x2x1
jax: 0.10.0
libtpu: 0.0.40
codegen_flags: <defaults>
</compile_context>

<pallas_src>
import jax
import jax.numpy as jnp
from jax.experimental import pallas as pl
from jax.experimental.pallas import tpu as pltpu


def _round_up(x, m):
    return (x + m - 1) // m * m


def _pad_lanes(x, width):
    """Zero-pad the last (lane) dim of x up to `width` (static widths only)."""
    pad = width - x.shape[-1]
    if pad == 0:
        return x
    return jnp.concatenate([x, jnp.zeros((x.shape[0], pad), dtype=x.dtype)], axis=1)


def _encoder_kernel(a_ref, x_ref, w0_ref, w1_ref, b0_ref, b1_ref,
                    o_ref, rhs_ref, act_ref, acc_ref):
    """Fused 2-layer GCN for the clean + corrupted branch (lane-concatenated).

    grid = (phase, row_tile, k_tile):
      phase 0: h = relu(A @ (X_stack @ W0) + b0)   (stored to act scratch, bf16)
      phase 1: o = A @ (h @ W1) + b1               (written to the [N, 2H] output)
    """
    p = pl.program_id(0)
    i = pl.program_id(1)
    k = pl.program_id(2)
    nk = pl.num_programs(2)

    tm, tk = a_ref.shape
    H = w0_ref.shape[1]
    HP = rhs_ref.shape[1]          # lane-padded width of the branch-concat (>= 2H)
    H2 = 2 * H

    # ---- build the aggregation RHS once per phase (first grid step of the phase) ----
    @pl.when((i == 0) & (k == 0))
    def _build_rhs():
        @pl.when(p == 0)
        def _layer1_rhs():
            # One stacked feature transform for both branches: [2N, F] @ [F, H].
            xw0 = jnp.dot(x_ref[...], w0_ref[...],
                          preferred_element_type=jnp.float32)
            n = xw0.shape[0] // 2
            cat = jnp.concatenate([xw0[:n], xw0[n:]], axis=1)        # [N, 2H]
            rhs_ref[...] = _pad_lanes(cat, HP).astype(rhs_ref.dtype)

        @pl.when(p == 1)
        def _layer2_rhs():
            act = act_ref[...]                                       # [N, HP] bf16
            hw1_a = jnp.dot(act[:, :H], w1_ref[...],
                            preferred_element_type=jnp.float32)
            hw1_b = jnp.dot(act[:, H:H2], w1_ref[...],
                            preferred_element_type=jnp.float32)
            cat = jnp.concatenate([hw1_a, hw1_b], axis=1)            # [N, 2H]
            rhs_ref[...] = _pad_lanes(cat, HP).astype(rhs_ref.dtype)

    # ---- k-reduction: acc += A_tile @ RHS_slice ----
    @pl.when(k == 0)
    def _init():
        acc_ref[...] = jnp.zeros_like(acc_ref)

        @pl.when(p == 0)
        def _():
            # Phase 0 never produces the final output; make its (harmless,
            # later-overwritten) writeback deterministic.
            o_ref[...] = jnp.zeros_like(o_ref)

    k_start = pl.multiple_of(k * tk, tk)
    rhs_slice = rhs_ref[pl.ds(k_start, tk), :]                       # [tk, HP] bf16
    acc_ref[...] += jnp.dot(a_ref[...], rhs_slice,
                            preferred_element_type=jnp.float32)

    # ---- finalize at the last k tile (bias added exactly once) ----
    @pl.when(k == nk - 1)
    def _finalize():
        @pl.when(p == 0)
        def _store_act():
            h = jnp.maximum(acc_ref[...] + b0_ref[...], 0.0)         # [tm, HP] f32
            row = pl.multiple_of(i * tm, tm)
            act_ref[pl.ds(row, tm), :] = h.astype(act_ref.dtype)

        @pl.when(p == 1)
        def _store_out():
            res = acc_ref[...] + b1_ref[...]                         # [tm, HP] f32
            o_ref[...] = res[:, :H2].astype(o_ref.dtype)


def encoder_forward(a_hat, features, perm, params, *, tm=128, tk=128):
    """Encoder.forward for corrupt=False and corrupt=True in one Pallas kernel.

    Returns (h_clean, h_corrupt), each [N, n_hidden] float32.
    """
    w0, b0, w1, b1 = params
    N = a_hat.shape[0]
    F = features.shape[1]
    H = w0.shape[1]

    tm = min(tm, N)
    tk = min(tk, N)
    assert N % tm == 0 and N % tk == 0, "row/k tile sizes must divide N"
    H2 = 2 * H
    HP = _round_up(max(H2, 128), 128)        # lane-padded branch-concat width

    # Branch-stacked node features: rows [0,N) = clean, [N,2N) = corrupted.
    x_stack = jnp.concatenate([features, features[perm]], axis=0)

    # bf16 MXU operands (f32 accumulation inside the kernel); biases stay f32.
    a_bf = a_hat.astype(jnp.bfloat16)
    x_bf = x_stack.astype(jnp.bfloat16)
    w0_bf = w0.astype(jnp.bfloat16)
    w1_bf = w1.astype(jnp.bfloat16)

    def cat_pad_bias(b):
        bc = jnp.concatenate([b.reshape(1, H)] * 2, axis=1).astype(jnp.float32)
        if HP > H2:
            bc = jnp.concatenate([bc, jnp.zeros((1, HP - H2), jnp.float32)], axis=1)
        return bc                                                     # [1, HP]

    b0c = cat_pad_bias(b0)
    b1c = cat_pad_bias(b1)

    grid = (2, N // tm, N // tk)             # (phase, row tile, k tile)

    out = pl.pallas_call(
        _encoder_kernel,
        out_shape=jax.ShapeDtypeStruct((N, H2), jnp.float32),
        grid_spec=pltpu.PrefetchScalarGridSpec(
            num_scalar_prefetch=0,
            grid=grid,
            in_specs=[
                pl.BlockSpec((tm, tk), lambda p, i, k: (i, k)),       # A_hat tile
                pl.BlockSpec((2 * N, F), lambda p, i, k: (0, 0)),     # stacked features
                pl.BlockSpec((F, H), lambda p, i, k: (0, 0)),         # W0
                pl.BlockSpec((H, H), lambda p, i, k: (0, 0)),         # W1
                pl.BlockSpec((1, HP), lambda p, i, k: (0, 0)),        # b0 (cat + pad)
                pl.BlockSpec((1, HP), lambda p, i, k: (0, 0)),        # b1 (cat + pad)
            ],
            out_specs=pl.BlockSpec((tm, H2), lambda p, i, k: (i, 0)),
            scratch_shapes=[
                pltpu.VMEM((N, HP), jnp.bfloat16),   # per-phase aggregation RHS
                pltpu.VMEM((N, HP), jnp.bfloat16),   # layer-1 ReLU activations
                pltpu.VMEM((tm, HP), jnp.float32),   # f32 accumulator
            ],
        ),
        compiler_params=pltpu.CompilerParams(
            # The phase/row axes share persistent VMEM scratch state across tiles and
            # k is a reduction, so every axis must stay "arbitrary" (no megacore split).
            dimension_semantics=("arbitrary", "arbitrary", "arbitrary"),
            vmem_limit_bytes=64 * 1024 * 1024,
        ),
    )(a_bf, x_bf, w0_bf, w1_bf, b0c, b1c)

    return out[:, :H], out[:, H:H2]


def _reference(a_hat, features, perm, params):
    """Pure-JAX reference emulating the kernel's bf16-operand / f32-accum precision."""
    w0, b0, w1, b1 = params
    bf = lambda t: t.astype(jnp.bfloat16).astype(jnp.float32)
    a = bf(a_hat)
    w0b, w1b = bf(w0), bf(w1)

    def gcn(x):
        xw0 = bf(bf(x) @ w0b)                          # bf16 RHS scratch
        h = bf(jnp.maximum(a @ xw0 + b0, 0.0))         # bf16 activation scratch
        hw1 = bf(h @ w1b)
        return a @ hw1 + b1

    return gcn(features), gcn(features[perm])


if __name__ == "__main__":
    N, F, H = 256, 32, 64          # nodes, in_feats, n_hidden (n_layers=1 GCN)
    key = jax.random.PRNGKey(0)
    k_adj, k_feat, k_perm, k_w0, k_b0, k_w1, k_b1 = jax.random.split(key, 7)

    # Dense normalized adjacency  D^-1/2 (A + I) D^-1/2  (stands in for the DGL graph).
    adj = (jax.random.uniform(k_adj, (N, N)) > 0.6).astype(jnp.float32)
    adj = jnp.maximum(adj, adj.T)
    adj = adj + jnp.eye(N, dtype=jnp.float32)
    deg = jnp.clip(adj.sum(1), 1.0, None)
    dinv = 1.0 / jnp.sqrt(deg)
    a_hat = adj * dinv[:, None] * dinv[None, :]

    features = jax.random.normal(k_feat, (N, F), dtype=jnp.float32)
    perm = jax.random.permutation(k_perm, N)           # torch.randperm (corrupt=True)

    w0 = 0.2 * jax.random.normal(k_w0, (F, H), dtype=jnp.float32)
    b0 = 0.1 * jax.random.normal(k_b0, (1, H), dtype=jnp.float32)
    w1 = 0.2 * jax.random.normal(k_w1, (H, H), dtype=jnp.float32)
    b1 = 0.1 * jax.random.normal(k_b1, (1, H), dtype=jnp.float32)
    params = (w0, b0, w1, b1)

    h_clean, h_corrupt = encoder_forward(a_hat, features, perm, params)
    h_clean, h_corrupt = jax.block_until_ready((h_clean, h_corrupt))

    r_clean, r_corrupt = _reference(a_hat, features, perm, params)
    assert jnp.allclose(h_clean, r_clean, rtol=1e-2, atol=1e-3), \
        float(jnp.max(jnp.abs(h_clean - r_clean)))
    assert jnp.allclose(h_corrupt, r_corrupt, rtol=1e-2, atol=1e-3), \
        float(jnp.max(jnp.abs(h_corrupt - r_corrupt)))
    print("KERNEL_OK")
</pallas_src>

<mosaic_0001>
module attributes {stable_mosaic.version = 11 : i64} {
  func.func @_encoder_kernel(%arg0: i32, %arg1: i32, %arg2: i32, %arg3: memref<128x128xbf16, #tpu.memory_space<vmem>>, %arg4: memref<512x32xbf16, #tpu.memory_space<vmem>>, %arg5: memref<32x64xbf16, #tpu.memory_space<vmem>>, %arg6: memref<64x64xbf16, #tpu.memory_space<vmem>>, %arg7: memref<1x128xf32, #tpu.memory_space<vmem>>, %arg8: memref<1x128xf32, #tpu.memory_space<vmem>>, %arg9: memref<128x128xf32, #tpu.memory_space<vmem>>, %arg10: memref<256x128xbf16, #tpu.memory_space<vmem>>, %arg11: memref<256x128xbf16, #tpu.memory_space<vmem>>, %arg12: memref<128x128xf32, #tpu.memory_space<vmem>>) attributes {dimension_semantics = [#tpu.dimension_semantics<arbitrary>, #tpu.dimension_semantics<arbitrary>, #tpu.dimension_semantics<arbitrary>], iteration_bounds = array<i64: 2, 2, 2>, scalar_prefetch = 0 : i64, scratch_operands = 3 : i64, tpu.core_type = #tpu.core_type<tc>, window_params = [{transform_indices = @transform_0, window_bounds = array<i64: 128, 128>}, {pipeline_mode = #tpu.pipeline_mode<synchronous>, transform_indices = @transform_1, window_bounds = array<i64: 512, 32>}, {pipeline_mode = #tpu.pipeline_mode<synchronous>, transform_indices = @transform_2, window_bounds = array<i64: 32, 64>}, {pipeline_mode = #tpu.pipeline_mode<synchronous>, transform_indices = @transform_3, window_bounds = array<i64: 64, 64>}, {pipeline_mode = #tpu.pipeline_mode<synchronous>, transform_indices = @transform_4, window_bounds = array<i64: 1, 128>}, {pipeline_mode = #tpu.pipeline_mode<synchronous>, transform_indices = @transform_5, window_bounds = array<i64: 1, 128>}, {transform_indices = @transform_6, window_bounds = array<i64: 128, 128>}]} {
    %c0_i32 = arith.constant 0 : i32
    %0 = arith.cmpi eq, %arg1, %c0_i32 : i32
    %c0_i32_0 = arith.constant 0 : i32
    %1 = arith.cmpi eq, %arg2, %c0_i32_0 : i32
    %2 = arith.andi %0, %1 : i1
    %3 = arith.extui %2 : i1 to i32
    %c0_i32_1 = arith.constant 0 : i32
    %4 = arith.cmpi ne, %3, %c0_i32_1 : i32
    scf.if %4 {
      %c0_i32_11 = arith.constant 0 : i32
      %20 = arith.cmpi eq, %arg0, %c0_i32_11 : i32
      %21 = arith.extui %20 : i1 to i32
      %c0_i32_12 = arith.constant 0 : i32
      %22 = arith.cmpi ne, %21, %c0_i32_12 : i32
      scf.if %22 {
        %c0_15 = arith.constant 0 : index
        %c0_16 = arith.constant 0 : index
        %26 = vector.load %arg4[%c0_15, %c0_16] : memref<512x32xbf16, #tpu.memory_space<vmem>>, vector<512x32xbf16>
        %c0_17 = arith.constant 0 : index
        %c0_18 = arith.constant 0 : index
        %27 = vector.load %arg5[%c0_17, %c0_18] : memref<32x64xbf16, #tpu.memory_space<vmem>>, vector<32x64xbf16>
        %cst_19 = arith.constant dense<0.000000e+00> : vector<512x64xf32>
        %28 = tpu.matmul %26, %27, %cst_19 {dimension_numbers = #tpu.dot_dimension_numbers<[1], [0], [0], [1], [0, 0, 1, 1], [], []>} : vector<512x32xbf16>, vector<32x64xbf16>, vector<512x64xf32> -> vector<512x64xf32>
        %29 = vector.extract_strided_slice %28 {offsets = [0, 0], sizes = [256, 64], strides = [1, 1]} : vector<512x64xf32> to vector<256x64xf32>
        %30 = vector.extract_strided_slice %28 {offsets = [256, 0], sizes = [256, 64], strides = [1, 1]} : vector<512x64xf32> to vector<256x64xf32>
        %31 = tpu.concatenate %29, %30 in 1 : vector<256x64xf32>, vector<256x64xf32> -> vector<256x128xf32>
        %32 = arith.truncf %31 : vector<256x128xf32> to vector<256x128xbf16>
        %c0_20 = arith.constant 0 : index
        %c0_21 = arith.constant 0 : index
        %33 = vector.load %arg10[%c0_20, %c0_21] : memref<256x128xbf16, #tpu.memory_space<vmem>>, vector<256x128xbf16>
        tpu.vector_store %arg10[%c0_20, %c0_21], %32 {strides = array<i32>} : memref<256x128xbf16, #tpu.memory_space<vmem>>, vector<256x128xbf16>,
      } else {
      }
      %c1_i32_13 = arith.constant 1 : i32
      %23 = arith.cmpi eq, %arg0, %c1_i32_13 : i32
      %24 = arith.extui %23 : i1 to i32
      %c0_i32_14 = arith.constant 0 : i32
      %25 = arith.cmpi ne, %24, %c0_i32_14 : i32
      scf.if %25 {
        %c0_15 = arith.constant 0 : index
        %c0_16 = arith.constant 0 : index
        %26 = vector.load %arg11[%c0_15, %c0_16] : memref<256x128xbf16, #tpu.memory_space<vmem>>, vector<256x128xbf16>
        %27 = vector.extract_strided_slice %26 {offsets = [0, 0], sizes = [256, 64], strides = [1, 1]} : vector<256x128xbf16> to vector<256x64xbf16>
        %c0_17 = arith.constant 0 : index
        %c0_18 = arith.constant 0 : index
        %28 = vector.load %arg6[%c0_17, %c0_18] : memref<64x64xbf16, #tpu.memory_space<vmem>>, vector<64x64xbf16>
        %cst_19 = arith.constant dense<0.000000e+00> : vector<256x64xf32>
        %29 = tpu.matmul %27, %28, %cst_19 {dimension_numbers = #tpu.dot_dimension_numbers<[1], [0], [0], [1], [0, 0, 1, 1], [], []>} : vector<256x64xbf16>, vector<64x64xbf16>, vector<256x64xf32> -> vector<256x64xf32>
        %30 = vector.extract_strided_slice %26 {offsets = [0, 64], sizes = [256, 64], strides = [1, 1]} : vector<256x128xbf16> to vector<256x64xbf16>
        %c0_20 = arith.constant 0 : index
        %c0_21 = arith.constant 0 : index
        %31 = vector.load %arg6[%c0_20, %c0_21] : memref<64x64xbf16, #tpu.memory_space<vmem>>, vector<64x64xbf16>
        %cst_22 = arith.constant dense<0.000000e+00> : vector<256x64xf32>
        %32 = tpu.matmul %30, %31, %cst_22 {dimension_numbers = #tpu.dot_dimension_numbers<[1], [0], [0], [1], [0, 0, 1, 1], [], []>} : vector<256x64xbf16>, vector<64x64xbf16>, vector<256x64xf32> -> vector<256x64xf32>
        %33 = tpu.concatenate %29, %32 in 1 : vector<256x64xf32>, vector<256x64xf32> -> vector<256x128xf32>
        %34 = arith.truncf %33 : vector<256x128xf32> to vector<256x128xbf16>
        %c0_23 = arith.constant 0 : index
        %c0_24 = arith.constant 0 : index
        %35 = vector.load %arg10[%c0_23, %c0_24] : memref<256x128xbf16, #tpu.memory_space<vmem>>, vector<256x128xbf16>
        tpu.vector_store %arg10[%c0_23, %c0_24], %34 {strides = array<i32>} : memref<256x128xbf16, #tpu.memory_space<vmem>>, vector<256x128xbf16>,
      } else {
      }
    } else {
    }
    %c0_i32_2 = arith.constant 0 : i32
    %5 = arith.cmpi eq, %arg2, %c0_i32_2 : i32
    %6 = arith.extui %5 : i1 to i32
    %c0_i32_3 = arith.constant 0 : i32
    %7 = arith.cmpi ne, %6, %c0_i32_3 : i32
    scf.if %7 {
      %cst_11 = arith.constant 0.000000e+00 : f32
      %20 = vector.broadcast %cst_11 : f32 to vector<128x128xf32>
      %c0_12 = arith.constant 0 : index
      %c0_13 = arith.constant 0 : index
      %21 = vector.load %arg12[%c0_12, %c0_13] : memref<128x128xf32, #tpu.memory_space<vmem>>, vector<128x128xf32>
      tpu.vector_store %arg12[%c0_12, %c0_13], %20 {strides = array<i32>} : memref<128x128xf32, #tpu.memory_space<vmem>>, vector<128x128xf32>,
      %c0_i32_14 = arith.constant 0 : i32
      %22 = arith.cmpi eq, %arg0, %c0_i32_14 : i32
      %23 = arith.extui %22 : i1 to i32
      %c0_i32_15 = arith.constant 0 : i32
      %24 = arith.cmpi ne, %23, %c0_i32_15 : i32
      scf.if %24 {
        %cst_16 = arith.constant 0.000000e+00 : f32
        %25 = vector.broadcast %cst_16 : f32 to vector<128x128xf32>
        %c0_17 = arith.constant 0 : index
        %c0_18 = arith.constant 0 : index
        %26 = vector.load %arg9[%c0_17, %c0_18] : memref<128x128xf32, #tpu.memory_space<vmem>>, vector<128x128xf32>
        tpu.vector_store %arg9[%c0_17, %c0_18], %25 {strides = array<i32>} : memref<128x128xf32, #tpu.memory_space<vmem>>, vector<128x128xf32>,
      } else {
      }
    } else {
    }
    %c128_i32 = arith.constant 128 : i32
    %8 = arith.muli %arg2, %c128_i32 : i32
    %9 = tpu.assume_multiple %8, 128 : i32
    %10 = arith.index_cast %9 : i32 to index
    %c0 = arith.constant 0 : index
    %11 = vector.load %arg10[%10, %c0] : memref<256x128xbf16, #tpu.memory_space<vmem>>, vector<128x128xbf16>
    %c0_4 = arith.constant 0 : index
    %c0_5 = arith.constant 0 : index
    %12 = vector.load %arg12[%c0_4, %c0_5] : memref<128x128xf32, #tpu.memory_space<vmem>>, vector<128x128xf32>
    %c0_6 = arith.constant 0 : index
    %c0_7 = arith.constant 0 : index
    %13 = vector.load %arg3[%c0_6, %c0_7] : memref<128x128xbf16, #tpu.memory_space<vmem>>, vector<128x128xbf16>
    %cst = arith.constant dense<0.000000e+00> : vector<128x128xf32>
    %14 = tpu.matmul %13, %11, %cst {dimension_numbers = #tpu.dot_dimension_numbers<[1], [0], [0], [1], [0, 0, 1, 1], [], []>} : vector<128x128xbf16>, vector<128x128xbf16>, vector<128x128xf32> -> vector<128x128xf32>
    %15 = arith.addf %12, %14 : vector<128x128xf32>
    %c0_8 = arith.constant 0 : index
    %c0_9 = arith.constant 0 : index
    %16 = vector.load %arg12[%c0_8, %c0_9] : memref<128x128xf32, #tpu.memory_space<vmem>>, vector<128x128xf32>
    tpu.vector_store %arg12[%c0_8, %c0_9], %15 {strides = array<i32>} : memref<128x128xf32, #tpu.memory_space<vmem>>, vector<128x128xf32>,
    %c1_i32 = arith.constant 1 : i32
    %17 = arith.cmpi eq, %arg2, %c1_i32 : i32
    %18 = arith.extui %17 : i1 to i32
    %c0_i32_10 = arith.constant 0 : i32
    %19 = arith.cmpi ne, %18, %c0_i32_10 : i32
    scf.if %19 {
      %c0_i32_11 = arith.constant 0 : i32
      %20 = arith.cmpi eq, %arg0, %c0_i32_11 : i32
      %21 = arith.extui %20 : i1 to i32
      %c0_i32_12 = arith.constant 0 : i32
      %22 = arith.cmpi ne, %21, %c0_i32_12 : i32
      scf.if %22 {
        %c0_15 = arith.constant 0 : index
        %c0_16 = arith.constant 0 : index
        %26 = vector.load %arg12[%c0_15, %c0_16] : memref<128x128xf32, #tpu.memory_space<vmem>>, vector<128x128xf32>
        %c0_17 = arith.constant 0 : index
        %c0_18 = arith.constant 0 : index
        %27 = vector.load %arg7[%c0_17, %c0_18] : memref<1x128xf32, #tpu.memory_space<vmem>>, vector<1x128xf32>
        %28 = vector.broadcast %27 : vector<1x128xf32> to vector<128x128xf32>
        %29 = arith.addf %26, %28 : vector<128x128xf32>
        %cst_19 = arith.constant 0.000000e+00 : f32
        %30 = vector.broadcast %cst_19 : f32 to vector<128x128xf32>
        %31 = arith.maximumf %29, %30 : vector<128x128xf32>
        %c128_i32_20 = arith.constant 128 : i32
        %32 = arith.muli %arg1, %c128_i32_20 : i32
        %33 = tpu.assume_multiple %32, 128 : i32
        %34 = arith.truncf %31 : vector<128x128xf32> to vector<128x128xbf16>
        %35 = arith.index_cast %33 : i32 to index
        %c0_21 = arith.constant 0 : index
        %36 = vector.load %arg11[%35, %c0_21] : memref<256x128xbf16, #tpu.memory_space<vmem>>, vector<128x128xbf16>
        tpu.vector_store %arg11[%35, %c0_21], %34 {strides = array<i32>} : memref<256x128xbf16, #tpu.memory_space<vmem>>, vector<128x128xbf16>,
      } else {
      }
      %c1_i32_13 = arith.constant 1 : i32
      %23 = arith.cmpi eq, %arg0, %c1_i32_13 : i32
      %24 = arith.extui %23 : i1 to i32
      %c0_i32_14 = arith.constant 0 : i32
      %25 = arith.cmpi ne, %24, %c0_i32_14 : i32
      scf.if %25 {
        %c0_15 = arith.constant 0 : index
        %c0_16 = arith.constant 0 : index
        %26 = vector.load %arg12[%c0_15, %c0_16] : memref<128x128xf32, #tpu.memory_space<vmem>>, vector<128x128xf32>
        %c0_17 = arith.constant 0 : index
        %c0_18 = arith.constant 0 : index
        %27 = vector.load %arg8[%c0_17, %c0_18] : memref<1x128xf32, #tpu.memory_space<vmem>>, vector<1x128xf32>
        %28 = vector.broadcast %27 : vector<1x128xf32> to vector<128x128xf32>
        %29 = arith.addf %26, %28 : vector<128x128xf32>
        %c0_19 = arith.constant 0 : index
        %c0_20 = arith.constant 0 : index
        %30 = vector.load %arg9[%c0_19, %c0_20] : memref<128x128xf32, #tpu.memory_space<vmem>>, vector<128x128xf32>
        tpu.vector_store %arg9[%c0_19, %c0_20], %29 {strides = array<i32>} : memref<128x128xf32, #tpu.memory_space<vmem>>, vector<128x128xf32>,
      } else {
      }
    } else {
    }
    return
  }
  func.func @transform_0(%arg0: i32, %arg1: i32, %arg2: i32) -> (i32, i32) {
    %c0_i32 = arith.constant 0 : i32
    return %arg1, %arg2 : i32, i32
  }
  func.func @transform_1(%arg0: i32, %arg1: i32, %arg2: i32) -> (i32, i32) {
    %c0_i32 = arith.constant 0 : i32
    %c0_i32_0 = arith.constant 0 : i32
    %c0_i32_1 = arith.constant 0 : i32
    return %c0_i32, %c0_i32_0 : i32, i32
  }
  func.func @transform_2(%arg0: i32, %arg1: i32, %arg2: i32) -> (i32, i32) {
    %c0_i32 = arith.constant 0 : i32
    %c0_i32_0 = arith.constant 0 : i32
    %c0_i32_1 = arith.constant 0 : i32
    return %c0_i32, %c0_i32_0 : i32, i32
  }
  func.func @transform_3(%arg0: i32, %arg1: i32, %arg2: i32) -> (i32, i32) {
    %c0_i32 = arith.constant 0 : i32
    %c0_i32_0 = arith.constant 0 : i32
    %c0_i32_1 = arith.constant 0 : i32
    return %c0_i32, %c0_i32_0 : i32, i32
  }
  func.func @transform_4(%arg0: i32, %arg1: i32, %arg2: i32) -> (i32, i32) {
    %c0_i32 = arith.constant 0 : i32
    %c0_i32_0 = arith.constant 0 : i32
    %c0_i32_1 = arith.constant 0 : i32
    return %c0_i32, %c0_i32_0 : i32, i32
  }
  func.func @transform_5(%arg0: i32, %arg1: i32, %arg2: i32) -> (i32, i32) {
    %c0_i32 = arith.constant 0 : i32
    %c0_i32_0 = arith.constant 0 : i32
    %c0_i32_1 = arith.constant 0 : i32
    return %c0_i32, %c0_i32_0 : i32, i32
  }
  func.func @transform_6(%arg0: i32, %arg1: i32, %arg2: i32) -> (i32, i32) {
    %c0_i32 = arith.constant 0 : i32
    %c0_i32_0 = arith.constant 0 : i32
    return %arg1, %c0_i32 : i32, i32
  }
}

</mosaic_0001>

<bundles_post_ra>
// kernel: tpu_custom_call.1
= control target key start
LH: loop header
LB: loop body
LE: loop exit
PB: predicated region body
PF: predicated region fallthrough
CT: control target
= control target key end

     0   :  { %s4502_s0 = inlined_call_operand.hbm [shape: bf16[256,256], index: 0, kind: input, shape index: {}]   ;;  %s4503_s1 = inlined_call_operand.hbm [shape: bf16[512,32], index: 1, kind: input, shape index: {}]   ;;  %s4504_s2 = inlined_call_operand.hbm [shape: bf16[32,64], index: 2, kind: input, shape index: {}]   ;;  %s4505_s3 = inlined_call_operand.hbm [shape: bf16[64,64], index: 3, kind: input, shape index: {}]   ;;  %s4506_s4 = inlined_call_operand.hbm [shape: f32[1,128], index: 4, kind: input, shape index: {}]   ;;  %s4507_s5 = inlined_call_operand.hbm [shape: f32[1,128], index: 5, kind: input, shape index: {}]   ;;  %s4508_s6 = inlined_call_operand.hbm [shape: f32[256,128], index: 6, kind: output, shape index: {}]  }
   0x1   :  { %4526 = sst [smem:[#allocation30_spill]] %s4503_s1 }
   0x2   :  { %4527 = sst [smem:[#allocation31_spill]] %s4504_s2 }
   0x3   :  { %4528 = sst [smem:[#allocation32_spill]] %s4505_s3 }
   0x4   :  { %4529 = sst [smem:[#allocation33_spill]] %s4506_s4 }
   0x5   :  { %4530 = sst [smem:[#allocation34_spill]] %s4508_s6 }
   0x6   :  { %11 = vsyncpa [#allocation6], 0 }
   0x7   :  { %13 = vsyncpa [#allocation6 + $0x1], 0 }
   0x8   :  { %14 = vsyncpa [#allocation9], 0 }
   0x9   :  { %15 = vsyncpa [#allocation12], 0 }
   0xa   :  { %16 = vsyncpa [#allocation15], 0 }
   0xb   :  { %17 = vsyncpa [#allocation7], 0 }
   0xc   :  { %19 = vsyncpa [#allocation7 + $0x1], 0  ;;  %s3665_s21 = smov 0   ;;  %s3667_s22 = smov 0  }
   0xd   :  { %s3669_s23 = smov 0   ;;  %s3671_s24 = smov 0  }
   0xe   :  { %s3673_s25 = smov 0   ;;  %s3675_s26 = smov 0  }
   0xf   :  { %s3677_s27 = smov 0   ;;  %s3679_s28 = smov 0  }
  0x10   :  { %s3681_s29 = smov 0   ;;  %s3683_s30 = smov 0  }
  0x11   :  { %s3685_s7 = smov 0   ;;  %s3687_s8 = smov 0  }
  0x12   :  { %s3689_s9 = smov 0  }
  0x13 LB: > { %4531 = sst [smem:[#allocation22_spill]] %s3564_s21  ;;  %s2467_s10 = sadd.s32 4294967295, %s3612_s9   ;;  %s3612_s9 = sphi %s3689_s9, %s25_s9   ;;  %s3608_s8 = sphi %s3687_s8, %s4591_s8   ;;  %s3604_s7 = sphi %s3685_s7, %s4590_s7   ;;  %s3600_s30 = sphi %s3683_s30, %s4589_s30   ;;  %s3596_s29 = sphi %s3681_s29, %s4588_s29   ;;  %s3592_s28 = sphi %s3679_s28, %s4587_s28   ;;  %s3588_s27 = sphi %s3677_s27, %s4586_s27   ;;  %s3584_s26 = sphi %s3675_s26, %s4585_s26   ;;  %s3580_s25 = sphi %s3673_s25, %s4584_s25   ;;  %s3576_s24 = sphi %s3671_s24, %s4583_s24   ;;  %s3572_s23 = sphi %s3669_s23, %s4582_s23   ;;  %s3568_s22 = sphi %s3667_s22, %s4581_s22   ;;  %s3564_s21 = sphi %s3665_s21, %s4579_s21  }
  0x14   : > { %4532 = sst [smem:[#allocation23_spill]] %s3568_s22  ;;  %s2468_s11 = sadd.s32 4294967294, %s3612_s9  }
  0x15   : > { %4533 = sst [smem:[#allocation24_spill]] %s3588_s27  ;;  %p66_p0 = scmp.ne.s32.totalorder %s3580_s25, %s3576_s24 }
  0x16   : > { %4534 = sst [smem:[#allocation25_spill]] %s3592_s28  ;;  %p3731_p1 = scmp.eq.s32.totalorder %s2467_s10, 0 }
  0x17   : > { %4535 = sst [smem:[#allocation26_spill]] %s3596_s29  ;;  %p194_p2 = scmp.ne.s32.totalorder %s3572_s23, %s3568_s22 }
  0x18   : > { %s4536_s12 = scalar_select %p3731_p1, 1, 0 }
  0x19   : > { %p195_p3 = scmp.eq.s32.totalorder %s2467_s10, 7  ;;  %p3739_p4 = por %p3731_p1, %p66_p0 }
  0x1a   : > { %4537 = sst [smem:[#allocation27_spill]] %s4536_s12  ;;  %p200_p5 = scmp.ne.s32.totalorder %s3568_s22, %s3564_s21 }
  0x1b   : > { %s4538_s13 = scalar_select %p3739_p4, 1, 0 }
  0x1c   : > { %p3745_p6 = por %p195_p3, %p194_p2  ;;  %p201_p7 = scmp.eq.s32.totalorder %s2468_s11, 7 }
  0x1d   : > { %p2469_p8 = scmp.ge.s32.totalorder %s3612_s9, 1  ;;  %p208_p9 = scmp.lt.s32.totalorder %s3612_s9, 9 }
  0x1e   : > { %s4539_s14 = scalar_select %p3745_p6, 1, 0 }
  0x1f   : > { %p3751_p10 = por %p201_p7, %p200_p5  ;;  %p3755_p11 = pnand %p2469_p8, %p208_p9 }
  0x20   : > { %4540 = sst [smem:[#allocation28_spill]] %s4539_s14  ;;  %s3614_s17 = smov [#allocation8]  }
  0x21   : > { %s4541_s15 = scalar_select %p3751_p10, 1, 0 }
  0x22   : > { %s4543_s16 = scalar_select %p3755_p11, 1, 0 }
  0x23   : > { %4542 = sst [smem:[#allocation29_spill]] %s4541_s15  ;;  %s220_s18 = sshll.u32 %s3614_s17, 4  ;;  %s221_s18 = int_to_ptr.vmem [resolvable:$true] %s220_s18 }
  0x24   : > { %p2932_p12 = pneg %p3755_p11  ;;  %s3615_s20 = smov [#allocation11]  }
  0x25   : > { %s246_s24 = sshll.u32 %s3615_s20, 4  ;;  %s4545_s1 = sld [smem:[#allocation30_spill]]  ;;  %s3767_s24 = int_to_ptr.vmem [resolvable:$true] %s246_s24 }
  0x26   : > { %p3763_p13 = pnand %p2932_p12, %p3731_p1 }
  0x28   : > { %p3777_p2 = pneg %p3763_p13 }
  0x2b   : > { %s3292_s15 = scalar_lea.hbm %s4545_s1, 4096 }
  0x2c   : > { %p3293_p0 = scmp.ne.s32.totalorder %s4545_s1, %s3292_s15  ;;  %p3299_p7 = scmp.lt.u32.totalorder %s3292_s15, %s4545_s1 }
  0x2e   : > { %p3295_p3 = pnand %p3777_p2, %p3293_p0 }
  0x30   : > { %p3296_p5 = pneg %p3295_p3 }
  0x32   : > { %p3301_p8 = pnand %p3299_p7, %p3296_p5 }
  0x34   : > { %3304 = shalt.err (!%p3301_p8)
}
  0x35   : > { %s3305_s10 = scalar_lea.vmem %s221_s18, 4096  ;;  %p3313_p6 = scmp.lt.s32.totalorder %s221_s18, %s221_s18 }
  0x36   : > { %p3306_p9 = scmp.ne.s32.totalorder %s221_s18, %s3305_s10  ;;  %p3314_p1 = scmp.lt.s32.totalorder %s3305_s10, %s3305_s10 }
  0x38   : > { %p3308_p12 = pnand %p3306_p9, %p3777_p2  ;;  %p3315_p4 = por %p3314_p1, %p3313_p6 }
  0x3a   : > { %p3309_p10 = pneg %p3308_p12 }
  0x3c   : > { %p3316_p11 = pnand %p3315_p4, %p3309_p10 }
  0x3e   : > { %3319 = shalt.err (!%p3316_p11)
}
  0x3f   : > { %s4524_s6 = smov 64   ;;  %s4525_s21 = smov 4  }
  0x40   : > { %2935 = dma.hbm_to_vmem [thread:$0]  (!%p3763_p13), %s4545_s1, 4096, %s221_s18, [#allocation9], %s4524_s6, %s4524_s6, %s4525_s21  }
  0x41   : > { %s4547_s3 = sld [smem:[#allocation32_spill]] }
  0x47   : > { %s3320_s29 = scalar_lea.hbm %s4547_s3, 512 }
  0x48   : > { %p3321_p1 = scmp.ne.s32.totalorder %s4547_s3, %s3320_s29  ;;  %p3327_p10 = scmp.lt.u32.totalorder %s3320_s29, %s4547_s3 }
  0x4a   : > { %p3323_p4 = pnand %p3321_p1, %p3777_p2 }
  0x4c   : > { %p3324_p6 = pneg %p3323_p4 }
  0x4e   : > { %p3329_p11 = pnand %p3327_p10, %p3324_p6 }
  0x50   : > { %3332 = shalt.err (!%p3329_p11)
}
  0x51   : > { %s3333_s18 = scalar_lea.vmem %s3767_s24, 512  ;;  %p3341_p7 = scmp.lt.s32.totalorder %s3767_s24, %s3767_s24 }
  0x52   : > { %p3334_p0 = scmp.ne.s32.totalorder %s3767_s24, %s3333_s18  ;;  %p3342_p8 = scmp.lt.s32.totalorder %s3333_s18, %s3333_s18 }
  0x54   : > { %p3336_p3 = pnand %p3334_p0, %p3777_p2  ;;  %p3343_p9 = por %p3342_p8, %p3341_p7 }
  0x56   : > { %p3337_p5 = pneg %p3336_p3 }
  0x58   : > { %p3344_p12 = pnand %p3343_p9, %p3337_p5 }
  0x5a   : > { %3347 = shalt.err (!%p3344_p12)
}
  0x5b   : > { %2941 = dma.hbm_to_vmem [thread:$0]  (!%p3763_p13), %s4547_s3, 512, %s3767_s24, [#allocation12], %s4524_s6, %s4524_s6, %s4525_s21  }
  0x5c   : > { %s3618_s28 = smov [#allocation10]   ;;  %s3619_s14 = smov [#allocation13]  }
  0x5d   : > { %s233_s29 = sshll.u32 %s3618_s28, 4  ;;  %s260_s15 = sshll.u32 %s3619_s14, 4  ;;  %s234_s29 = int_to_ptr.vmem [resolvable:$true] %s233_s29  ;;  %s261_s15 = int_to_ptr.vmem [resolvable:$true] %s260_s15 }
  0x5e   : > { %s4548_s2 = sld [smem:[#allocation31_spill]] }
  0x64   : > { %s3348_s10 = scalar_lea.hbm %s4548_s2, 256 }
  0x65   : > { %p3349_p1 = scmp.ne.s32.totalorder %s4548_s2, %s3348_s10  ;;  %p3355_p10 = scmp.lt.u32.totalorder %s3348_s10, %s4548_s2 }
  0x67   : > { %p3351_p4 = pnand %p3349_p1, %p3777_p2 }
  0x69   : > { %p3352_p6 = pneg %p3351_p4 }
  0x6b   : > { %p3357_p11 = pnand %p3355_p10, %p3352_p6 }
  0x6d   : > { %3360 = shalt.err (!%p3357_p11)
}
  0x6e   : > { %s3361_s24 = scalar_lea.vmem %s234_s29, 256  ;;  %p3369_p7 = scmp.lt.s32.totalorder %s234_s29, %s234_s29 }
  0x6f   : > { %p3362_p0 = scmp.ne.s32.totalorder %s234_s29, %s3361_s24  ;;  %p3370_p8 = scmp.lt.s32.totalorder %s3361_s24, %s3361_s24 }
  0x71   : > { %p3364_p3 = pnand %p3362_p0, %p3777_p2  ;;  %p3371_p9 = por %p3370_p8, %p3369_p7 }
  0x73   : > { %p3365_p5 = pneg %p3364_p3 }
  0x75   : > { %p3372_p12 = pnand %p3371_p9, %p3365_p5 }
  0x77   : > { %3375 = shalt.err (!%p3372_p12)
}
  0x78   : > { %2938 = dma.hbm_to_vmem [thread:$0]  (!%p3763_p13), %s4548_s2, 256, %s234_s29, [#allocation9], %s4524_s6, %s4524_s6, %s4525_s21  }
  0x79   : > { %s4549_s4 = sld [smem:[#allocation33_spill]] }
  0x7f   : > { %s3376_s14 = scalar_lea.hbm %s4549_s4, 16 }
  0x80   : > { %p3377_p1 = scmp.ne.s32.totalorder %s4549_s4, %s3376_s14  ;;  %p3383_p10 = scmp.lt.u32.totalorder %s3376_s14, %s4549_s4 }
  0x82   : > { %p3379_p4 = pnand %p3377_p1, %p3777_p2 }
  0x84   : > { %p3380_p6 = pneg %p3379_p4 }
  0x86   : > { %p3385_p11 = pnand %p3383_p10, %p3380_p6 }
  0x88   : > { %3388 = shalt.err (!%p3385_p11)
}
  0x89   : > { %s3389_s22 = scalar_lea.vmem %s261_s15, 16  ;;  %s3396_s29 = scalar_lea.vmem %s261_s15, 32 }
  0x8a   : > { %p3390_p0 = scmp.ne.s32.totalorder %s261_s15, %s3389_s22  ;;  %p3397_p7 = scmp.lt.s32.totalorder %s261_s15, %s261_s15 }
  0x8b   : > { %p3398_p8 = scmp.lt.s32.totalorder %s3396_s29, %s3389_s22 }
  0x8c   : > { %p3392_p3 = pnand %p3390_p0, %p3777_p2 }
  0x8d   : > { %p3399_p9 = por %p3398_p8, %p3397_p7 }
  0x8e   : > { %p3393_p5 = pneg %p3392_p3 }
  0x90   : > { %p3400_p12 = pnand %p3399_p9, %p3393_p5 }
  0x92   : > { %3403 = shalt.err (!%p3400_p12)
}
  0x93   : > { %2944 = dma.hbm_to_vmem [thread:$0]  (!%p3763_p13), %s4549_s4, 16, %s261_s15, [#allocation12]  }
  0x94   : > { %s3620_s12 = smov [#allocation14]   ;;  %s3404_s11 = scalar_lea.hbm %s4507_s5, 16 }
  0x95   : > { %s271_s27 = sshll.u32 %s3620_s12, 4  ;;  %p3405_p1 = scmp.ne.s32.totalorder %s4507_s5, %s3404_s11  ;;  %s272_s27 = int_to_ptr.vmem [resolvable:$true] %s271_s27 }
  0x96   : > { %p3411_p10 = scmp.lt.u32.totalorder %s3404_s11, %s4507_s5 }
  0x97   : > { %p3407_p4 = pnand %p3405_p1, %p3777_p2 }
  0x99   : > { %p3408_p6 = pneg %p3407_p4 }
  0x9b   : > { %p3413_p11 = pnand %p3411_p10, %p3408_p6 }
  0x9d   : > { %3416 = shalt.err (!%p3413_p11)
}
  0x9e   : > { %s3417_s15 = scalar_lea.vmem %s272_s27, 16  ;;  %s3424_s29 = scalar_lea.vmem %s272_s27, 32 }
  0x9f   : > { %p3418_p0 = scmp.ne.s32.totalorder %s272_s27, %s3417_s15  ;;  %p3425_p7 = scmp.lt.s32.totalorder %s272_s27, %s272_s27 }
  0xa0   : > { %p3426_p8 = scmp.lt.s32.totalorder %s3424_s29, %s3417_s15 }
  0xa1   : > { %p3420_p3 = pnand %p3418_p0, %p3777_p2 }
  0xa2   : > { %p3427_p9 = por %p3426_p8, %p3425_p7 }
  0xa3   : > { %p3421_p5 = pneg %p3420_p3 }
  0xa5   : > { %p3428_p12 = pnand %p3427_p9, %p3421_p5 }
  0xa7   : > { %3431 = shalt.err (!%p3428_p12)
}
  0xa8   : > { %2947 = dma.hbm_to_vmem [thread:$0]  (!%p3763_p13), %s4507_s5, 16, %s272_s27, [#allocation15]  }
  0xa9   : > { %s37_s17 = sadd.s32 1, %s3600_s30  ;;  %s40_s12 = sadd.s32 1, %s3604_s7 }
  0xaa   : > { %p38_p2 = scmp.ge.s32.totalorder %s37_s17, 2  ;;  %s44_s19 = sadd.s32 1, %s3608_s8 }
  0xab   : > { %s53_s28 = sadd.s32 1, %s3584_s26  ;;  %p60_p1 = scmp.ne.s32.totalorder %s3584_s26, %s3580_s25 }
  0xac   : > { %s4593_s17 = smov (%p38_p2, %s37_s17), 0  ;;  %s4595_s12 = smov (!%p38_p2, %s40_s12), %s3604_s7 }
  0xad   : > { %s49_s14 = ssub.s32 %s3600_s30, %s4593_s17  ;;  %p61_p4 = scmp.eq.s32.totalorder %s3612_s9, 0 }
  0xae   : > { %p42_p6 = scmp.ge.s32.totalorder %s4595_s12, 2  ;;  %s184_s27 = sadd.s32 1, %s3572_s23 }
  0xaf   : > { %p3892_p13 = por %p61_p4, %p60_p1  ;;  %p2961_p10 = scmp.lt.s32.totalorder %s3612_s9, 8 }
  0xb0   : > { %s4597_s12 = smov (%p42_p6, %s4595_s12), 0  ;;  %s4599_s19 = smov (!%p42_p6, %s44_s19), %s3608_s8 }
  0xb1   : > { %s48_s20 = ssub.s32 %s3604_s7, %s4597_s12  ;;  %s282_s10 = sand.u32 1, %s3584_s26  }
  0xb2   : > { %p46_p11 = scmp.ge.s32.totalorder %s4599_s19, 2  ;;  %s50_s18 = sor.u32 %s49_s14, %s48_s20 }
  0xb3   : > { %p51_p0 = scmp.eq.s32.totalorder %s50_s18, 0  ;;  %p182_p3 = scmp.eq.s32.totalorder %s48_s20, 0 }
  0xb4   : > { %s4601_s19 = smov (%p46_p11, %s4599_s19), 0  ;;  %s2476_s29 = sshll.u32 %s282_s10, 6 }
  0xb5   : > { %s3906_s22 = scalar_select %p51_p0, %s3584_s26, %s53_s28  }
  0xb6   : > { %s3909_s15 = scalar_select %p182_p3, %s3572_s23, %s184_s27  }
  0xb7   : > { %s2616_s24 = sshll.u32 %s3604_s7, 5  ;;  %s286_s6 = scalar_lea.vmem [#allocation5], %s2476_s29 }
  0xb8   : > { %s292_s1 = sadd.s32 %s3600_s30, %s2616_s24  ;;  %s295_s21 = sshll.u32 %s286_s6, 4  ;;  %s3913_s21 = int_to_ptr.vmem [resolvable:$true] %s295_s21 }
  0xb9   : > { %s2479_s2 = sshll.u32 %s292_s1, 6  ;;  %p3924_p5 = pnand %p2961_p10, %p3892_p13 }
  0xba   : > { %s3918_s14 = scalar_lea.hbm %s4502_s0, %s2479_s2  ;;  %s3928_s6 = scalar_lea.sflag [#allocation6], %s282_s10 }
  0xbb   : > { %s3432_s27 = scalar_lea.hbm %s3918_s14, 1024  ;;  %p3434_p8 = pneg %p3924_p5 }
  0xbc   : > { %p3433_p7 = scmp.ne.s32.totalorder %s3918_s14, %s3432_s27  ;;  %s3437_s4 = scalar_lea.hbm %s4502_s0, 4096 }
  0xbd   : > { %p3438_p2 = scmp.lt.u32.totalorder %s3918_s14, %s4502_s0  ;;  %p3439_p1 = scmp.lt.u32.totalorder %s3437_s4, %s3432_s27 }
  0xbe   : > { %p3435_p9 = pnand %p3434_p8, %p3433_p7  ;;  %p3441_p6 = scmp.lt.u32.totalorder %s3432_s27, %s3918_s14 }
  0xbf   : > { %p3440_p4 = por %p3439_p1, %p3438_p2 }
  0xc0   : > { %p3436_p12 = pneg %p3435_p9 }
  0xc1   : > { %p3442_p13 = por %p3441_p6, %p3440_p4 }
  0xc3   : > { %p3443_p10 = pnand %p3442_p13, %p3436_p12 }
  0xc5   : > { %3446 = shalt.err (!%p3443_p10)
}
  0xc6   : > { %s3447_s10 = scalar_lea.vmem %s3913_s21, 1024  ;;  %s3621_s18 = smov [#allocation5]  }
  0xc7   : > { %p3448_p11 = scmp.ne.s32.totalorder %s3913_s21, %s3447_s10  ;;  %s3452_s29 = sshll.u32 %s3621_s18, 4  ;;  %s3453_s29 = int_to_ptr.vmem [resolvable:$false] %s3452_s29 }
  0xc8   : > { %s3454_s24 = scalar_lea.vmem %s3453_s29, 2048  ;;  %p3455_p7 = scmp.lt.s32.totalorder %s3913_s21, %s3453_s29 }
  0xc9   : > { %p3450_p0 = pnand %p3448_p11, %p3434_p8  ;;  %p3456_p9 = scmp.lt.s32.totalorder %s3454_s24, %s3447_s10 }
  0xcb   : > { %p3451_p3 = pneg %p3450_p0  ;;  %p3457_p2 = por %p3456_p9, %p3455_p7 }
  0xcd   : > { %p3458_p1 = pnand %p3457_p2, %p3451_p3 }
  0xcf   : > { %3461 = shalt.err (!%p3458_p1)
}
  0xd0   : > { %s3622_s1 = smov 128   ;;  %s4552_s27 = smov 4  }
  0xd1   : > { %s4553_s2 = smov 64   ;;  %p4554_p8 = scmp.ne.s32.totalorder %s4543_s16, 0 }
  0xd2   : > { %2951 = dma.hbm_to_vmem [thread:$0]  (!%p3924_p5), %s3918_s14, 1024, %s3913_s21, %s3928_s6, %s3622_s1, %s4553_s2, %s4552_s27  }
  0xd3   : > { %307 = sbr.rel (%p4554_p8) target bundleno = 1529 (0x5f9), region = 44  ;;  %s309_s3 = sand.u32 (!%p4554_p8), 1, %s3580_s25  }
  0xd4   : > { %s2481_s4 = sshll.u32 (!%p4554_p8), %s309_s3, 6  ;;  %s310_s11 = scalar_lea.sflag (!%p4554_p8), [#allocation6], %s309_s3 }
  0xd5   : > { %s3961_s20 = scalar_lea.vmem (!%p4554_p8), [#allocation5], %s2481_s4  ;;  %p4555_p12 = scmp.ne.s32.totalorder (!%p4554_p8), %s4538_s13, 0 }
  0xda   : > { %3543 = dma.done.wait (%p4555_p12), %s310_s11, 1024  }
  0xdb   : > { %3545 = vsyncadd (%p4555_p12), %s310_s11, 4294966272  ;;  %s4556_s28 = sld [smem:[#allocation27_spill]] }
  0xe1   : > { %p4557_p4 = scmp.ne.s32.totalorder %s4556_s28, 0 }
  0xe3   : > { %3547 = dma.done.wait (%p4557_p4), [#allocation9], 4352  }
  0xe4   : > { %3549 = vsyncadd (%p4557_p4), [#allocation9], 4294962944 }
  0xe5   : > { %3551 = dma.done.wait (%p4557_p4), [#allocation12], 528  }
  0xe6   : > { %3553 = vsyncadd (%p4557_p4), [#allocation12], 4294966768 }
  0xe7   : > { %3555 = dma.done.wait (%p4557_p4), [#allocation15], 16  }
  0xe8   : > { %3557 = vsyncadd (%p4557_p4), [#allocation15], 4294967280  ;;  %s4558_s13 = sld [smem:[#allocation23_spill]]  ;;  %s4559_s16 = sld [smem:[#allocation25_spill]] }
  0xe9   : > { %s4560_s21 = sld [smem:[#allocation24_spill]] }
  0xee   : > { %s359_s14 = sand.u32 1, %s4558_s13   ;;  %p365_p5 = scmp.eq.s32.totalorder %s4559_s16, 0 }
  0xef   : > { %s2487_s6 = sshll.u32 %s359_s14, 7  ;;  %p366_p6 = scmp.eq.s32.totalorder %s4560_s21, 0 }
  0xf0   : > { %s3984_s10 = scalar_lea.vmem [#allocation16], %s2487_s6 }
  0xf1   : > { %p367_p13 = pnand %p366_p6, %p365_p5 }
  0xf2   : > { %s4561_s18 = sld [smem:[#allocation26_spill]] (!%p367_p13) }
  0xf3   : > { %370 = sbr.rel (%p367_p13) target bundleno = 1174 (0x496), region = 72 }
  0xf8   : > { %p2488_p10 = scmp.ne.s32.totalorder (!%p367_p13), %s4561_s18, 0 }
  0xfa   : > { %374 = sbr.rel (%p2488_p10) target bundleno = 653 (0x28d), region = 76  ;;  %v3166_v0 = vld [vmem:[#allocation10] sm:$0xff] (!%p2488_p10)   ;;  %v3167_v1 = vld [vmem:[#allocation10 + $0x8] sm:$0xff] (!%p2488_p10)   ;;  %vm615_vm0 = vcmask (!%p2488_p10), 261120   ;;  %v3170_v4 = vld [vmem:[#allocation8 + $0x90] sm:$0xff] (!%p2488_p10)   ;;  %s3623_s29 = smov (!%p2488_p10), 64  }
  0xfb   : > { %2888 = vmatprep.subr.bf16.mxu1 (!%p2488_p10), %v3166_v0  ;;  %v3168_v2 = vld [vmem:[#allocation8 + $0x80] sm:$0xff] (!%p2488_p10)   ;;  %2708 = vmatprep.subr.bf16.mxu0 (!%p2488_p10), %v3166_v0  ;;  %v3169_v3 = vld [vmem:[#allocation8 + $0x88] sm:$0xff] (!%p2488_p10)   ;;  %v3171_v5 = vld [vmem:[#allocation8 + $0x98] sm:$0xff] (!%p2488_p10)   ;;  %vm1129_vm1 = vcmask (!%p2488_p10), 523264  }
  0xfc   : > { %2890 = vmatpush3.bf16.msra.mxu1 (!%p2488_p10), %v3166_v0  ;;  %2709 = vmatpush3.bf16.msra.mxu0 (!%p2488_p10), %v3166_v0  ;;  %v3172_v6 = vld [vmem:[#allocation8 + $0xa0] sm:$0xff] (!%p2488_p10)   ;;  %v3185_v8 = vld [vmem:[#allocation8 + $0x8] sm:$0xff] (!%p2488_p10)   ;;  %v3186_v9 = vld [vmem:[#allocation8 + $0x10] sm:$0xff] (!%p2488_p10)  }
  0xfd   : > { %2889 = vmatprep.subr.bf16.mxu1 (!%p2488_p10), %v3167_v1  ;;  %2744 = vmatprep.mubr.msk.bf16.mxu1 (!%p2488_p10), %vm615_vm0, %v3168_v2  ;;  %v3184_v7 = vld [vmem:[#allocation8] sm:$0xff] (!%p2488_p10)   ;;  %v3173_v10 = vld [vmem:[#allocation8 + $0xa8] sm:$0xff] (!%p2488_p10)   ;;  %v3174_v11 = vld [vmem:[#allocation8 + $0xb0] sm:$0xff] (!%p2488_p10)  }
  0xfe   : > { %2710 = vmatprep.subr.bf16.mxu0 (!%p2488_p10), %v3167_v1  ;;  %2712 = vmatprep.mubr.msk.bf16.mxu0 (!%p2488_p10), %vm615_vm0, %v3184_v7  ;;  %v3187_v12 = vld [vmem:[#allocation8 + $0x18] sm:$0xff] (!%p2488_p10)   ;;  %v3188_v13 = vld [vmem:[#allocation8 + $0x20] sm:$0xff] (!%p2488_p10)   ;;  %v3189_v16 = vld [vmem:[#allocation8 + $0x28] sm:$0xff] (!%p2488_p10)  }
  0xff   : > { %v3175_v14 = vld [vmem:[#allocation8 + $0xb8] sm:$0xff] (!%p2488_p10)   ;;  %v3176_v15 = vld [vmem:[#allocation8 + $0xc0] sm:$0xff] (!%p2488_p10)   ;;  %v3190_v17 = vld [vmem:[#allocation8 + $0x30] sm:$0xff] (!%p2488_p10)  }
 0x100   : > { %2891 = vmatpush3.bf16.msra.mxu1 (!%p2488_p10), %v3167_v1  ;;  %2711 = vmatpush3.bf16.msra.mxu0 (!%p2488_p10), %v3167_v1  ;;  %v3177_v18 = vld [vmem:[#allocation8 + $0xc8] sm:$0xff] (!%p2488_p10)   ;;  %v3178_v19 = vld [vmem:[#allocation8 + $0xd0] sm:$0xff] (!%p2488_p10)   ;;  %v3191_v20 = vld [vmem:[#allocation8 + $0x38] sm:$0xff] (!%p2488_p10)  }
 0x101   : > { %v3192_v21 = vld [vmem:[#allocation8 + $0x40] sm:$0xff]   ;;  %v3179_v22 = vld [vmem:[#allocation8 + $0xd8] sm:$0xff]   ;;  %v3193_v24 = vld [vmem:[#allocation8 + $0x48] sm:$0xff]  }
 0x102   : > { %v3180_v23 = vld [vmem:[#allocation8 + $0xe0] sm:$0xff]   ;;  %v3194_v25 = vld [vmem:[#allocation8 + $0x50] sm:$0xff]   ;;  %v3181_v26 = vld [vmem:[#allocation8 + $0xe8] sm:$0xff]  }
 0x103   : > { %2745 = vmatmul.mubr.msk.bf16.vlgmr.msra.gmra.mrb[0].mxu1 %vm615_vm0, %v3169_v3  ;;  %2713 = vmatmul.mubr.msk.bf16.vlgmr.msra.gmra.mrb[0].mxu0 %vm615_vm0, %v3185_v8  ;;  %v3182_v27 = vld [vmem:[#allocation8 + $0xf0] sm:$0xff]   ;;  %v3195_v28 = vld [vmem:[#allocation8 + $0x58] sm:$0xff]   ;;  %v3196_v29 = vld [vmem:[#allocation8 + $0x60] sm:$0xff]  }
 0x104   : > { %2748 = vmatprep.mubr.msk.bf16.mxu1 %vm615_vm0, %v3170_v4  ;;  %2716 = vmatprep.mubr.msk.bf16.mxu0 %vm615_vm0, %v3186_v9  ;;  %v3183_v30 = vld [vmem:[#allocation8 + $0xf8] sm:$0xff]   ;;  %v3197_v31 = vld [vmem:[#allocation8 + $0x68] sm:$0xff]   ;;  %v3198_v32 = vld [vmem:[#allocation8 + $0x70] sm:$0xff]  }
 0x105   : > { %v3199_v33 = vld [vmem:[#allocation8 + $0x78] sm:$0xff]  }
 0x10b   : > { %2749 = vmatmul.mubr.msk.bf16.gmra.mrb[4].mxu1 %vm615_vm0, %v3171_v5  ;;  %2717 = vmatmul.mubr.msk.bf16.gmra.mrb[4].mxu0 %vm615_vm0, %v3187_v12 }
 0x10c   : > { %2752 = vmatprep.mubr.msk.bf16.mxu1 %vm615_vm0, %v3172_v6  ;;  %2720 = vmatprep.mubr.msk.bf16.mxu0 %vm615_vm0, %v3188_v13 }
 0x113   : > { %2753 = vmatmul.mubr.msk.bf16.gmra.mrb[8].mxu1 %vm615_vm0, %v3173_v10  ;;  %2721 = vmatmul.mubr.msk.bf16.gmra.mrb[8].mxu0 %vm615_vm0, %v3189_v16 }
 0x114   : > { %2756 = vmatprep.mubr.msk.bf16.mxu1 %vm615_vm0, %v3174_v11  ;;  %2724 = vmatprep.mubr.msk.bf16.mxu0 %vm615_vm0, %v3190_v17 }
 0x11b   : > { %2757 = vmatmul.mubr.msk.bf16.gmra.mrb[12].mxu1 %vm615_vm0, %v3175_v14  ;;  %2725 = vmatmul.mubr.msk.bf16.gmra.mrb[12].mxu0 %vm615_vm0, %v3191_v20 }
 0x11c   : > { %2760 = vmatprep.mubr.msk.bf16.mxu1 %vm615_vm0, %v3176_v15  ;;  %2728 = vmatprep.mubr.msk.bf16.mxu0 %vm615_vm0, %v3192_v21 }
 0x123   : > { %2761 = vmatmul.mubr.msk.bf16.gmra.mrb[16].mxu1 %vm615_vm0, %v3177_v18  ;;  %2729 = vmatmul.mubr.msk.bf16.gmra.mrb[16].mxu0 %vm615_vm0, %v3193_v24 }
 0x124   : > { %2764 = vmatprep.mubr.msk.bf16.mxu1 %vm615_vm0, %v3178_v19  ;;  %2732 = vmatprep.mubr.msk.bf16.mxu0 %vm615_vm0, %v3194_v25 }
 0x12b   : > { %2765 = vmatmul.mubr.msk.bf16.gmra.mrb[20].mxu1 %vm615_vm0, %v3179_v22  ;;  %2733 = vmatmul.mubr.msk.bf16.gmra.mrb[20].mxu0 %vm615_vm0, %v3195_v28 }
 0x12c   : > { %2768 = vmatprep.mubr.msk.bf16.mxu1 %vm615_vm0, %v3180_v23  ;;  %2736 = vmatprep.mubr.msk.bf16.mxu0 %vm615_vm0, %v3196_v29 }
 0x133   : > { %2769 = vmatmul.mubr.msk.bf16.gmra.mrb[24].mxu1 %vm615_vm0, %v3181_v26  ;;  %2737 = vmatmul.mubr.msk.bf16.gmra.mrb[24].mxu0 %vm615_vm0, %v3197_v31 }
 0x134   : > { %2772 = vmatprep.mubr.msk.bf16.mxu1 %vm615_vm0, %v3182_v27  ;;  %2740 = vmatprep.mubr.msk.bf16.mxu0 %vm615_vm0, %v3198_v32 }
 0x13b   : > { %2773 = vmatmul.mubr.msk.bf16.gmra.mrb[28].mxu1 %vm615_vm0, %v3183_v30  ;;  %2741 = vmatmul.mubr.msk.bf16.gmra.mrb[28].mxu0 %vm615_vm0, %v3199_v33 }
 0x1d6   : > { %v2746_v34 = vpop.f32.mrb[0].mxu1  ;;  %v4021_v45 = vpop.f32.mrb[0].mxu0 }
 0x1d7   : > { %v874_v35 = vpop.f32.mrb[1].mxu1  ;;  %v4023_v47 = vpop.f32.mrb[1].mxu0 }
 0x1d8   : > { %v2747_v36 = vpop.f32.mrb[2].mxu1  ;;  %v4026_v48 = vpop.f32.mrb[2].mxu0 }
 0x1d9   : > { %v3086_v37 = vpack.i.bf16 %v2747_v36, %v2746_v34  ;;  %v877_v38 = vpop.f32.mrb[3].mxu1  ;;  %v4028_v49 = vpop.f32.mrb[3].mxu0 }
 0x1da   : > { %v3091_v39 = vpack.i.bf16 %v877_v38, %v874_v35 }
 0x1db   : > { %3087 = vrot.lane.b32.xlu0 %v3086_v37, %s3623_s29 }
 0x1de   : > { %v2750_v40 = vpop.f32.mrb[4].mxu1  ;;  %v4031_v55 = vpop.f32.mrb[4].mxu0 }
 0x1df   : > { %3092 = vrot.lane.b32.xlu0 %v3091_v39, %s3623_s29  ;;  %v890_v41 = vpop.f32.mrb[5].mxu1  ;;  %v4033_v57 = vpop.f32.mrb[5].mxu0 }
 0x1e0   : > { %v2751_v42 = vpop.f32.mrb[6].mxu1  ;;  %v4036_v58 = vpop.f32.mrb[6].mxu0 }
 0x1e1   : > { %v3096_v43 = vpack.i.bf16 %v2751_v42, %v2750_v40  ;;  %v893_v44 = vpop.f32.mrb[7].mxu1  ;;  %v4039_v59 = vpop.f32.mrb[7].mxu0 }
 0x1e2   : > { %v3101_v46 = vpack.i.bf16 %v893_v44, %v890_v41 }
 0x1e3   : > { %3097 = vrot.lane.b32.xlu1 %v3096_v43, %s3623_s29 }
 0x1e6   : > { %v2754_v50 = vpop.f32.mrb[8].mxu1  ;;  %v4041_v1 = vpop.f32.mrb[8].mxu0 }
 0x1e7   : > { %3102 = vrot.lane.b32.xlu1 %v3101_v46, %s3623_s29  ;;  %v906_v51 = vpop.f32.mrb[9].mxu1  ;;  %v4043_v3 = vpop.f32.mrb[9].mxu0 }
 0x1e8   : > { %v2755_v52 = vpop.f32.mrb[10].mxu1  ;;  %v4046_v4 = vpop.f32.mrb[10].mxu0 }
 0x1e9   : > { %v3106_v53 = vpack.i.bf16 %v2755_v52, %v2754_v50  ;;  %v909_v54 = vpop.f32.mrb[11].mxu1  ;;  %v4049_v5 = vpop.f32.mrb[11].mxu0 }
 0x1ea   : > { %v3111_v56 = vpack.i.bf16 %v909_v54, %v906_v51 }
 0x1eb   : > { %3107 = vrot.lane.b32.xlu1 %v3106_v53, %s3623_s29 }
 0x1ec   : > { %3112 = vrot.lane.b32.xlu0 %v3111_v56, %s3623_s29 }
 0x1ee   : > { %v2758_v60 = vpop.f32.mrb[12].mxu1  ;;  %v4051_v11 = vpop.f32.mrb[12].mxu0 }
 0x1ef   : > { %v922_v61 = vpop.f32.mrb[13].mxu1  ;;  %v4053_v13 = vpop.f32.mrb[13].mxu0 }
 0x1f0   : > { %v2759_v62 = vpop.f32.mrb[14].mxu1  ;;  %v4056_v14 = vpop.f32.mrb[14].mxu0 }
 0x1f1   : > { %v3116_v63 = vpack.i.bf16 %v2759_v62, %v2758_v60  ;;  %v925_v0 = vpop.f32.mrb[15].mxu1  ;;  %v4059_v15 = vpop.f32.mrb[15].mxu0 }
 0x1f2   : > { %v3121_v2 = vpack.i.bf16 %v925_v0, %v922_v61 }
 0x1f3   : > { %3117 = vrot.lane.b32.xlu1 %v3116_v63, %s3623_s29 }
 0x1f4   : > { %3122 = vrot.lane.b32.xlu0 %v3121_v2, %s3623_s29 }
 0x1f6   : > { %v2762_v6 = vpop.f32.mrb[16].mxu1  ;;  %v4061_v21 = vpop.f32.mrb[16].mxu0 }
 0x1f7   : > { %v938_v7 = vpop.f32.mrb[17].mxu1  ;;  %v4063_v23 = vpop.f32.mrb[17].mxu0 }
 0x1f8   : > { %v2763_v8 = vpop.f32.mrb[18].mxu1  ;;  %v4066_v24 = vpop.f32.mrb[18].mxu0 }
 0x1f9   : > { %v3126_v9 = vpack.i.bf16 %v2763_v8, %v2762_v6  ;;  %v941_v10 = vpop.f32.mrb[19].mxu1  ;;  %v4069_v25 = vpop.f32.mrb[19].mxu0 }
 0x1fa   : > { %v3131_v12 = vpack.i.bf16 %v941_v10, %v938_v7 }
 0x1fb   : > { %3127 = vrot.lane.b32.xlu1 %v3126_v9, %s3623_s29 }
 0x1fc   : > { %3132 = vrot.lane.b32.xlu0 %v3131_v12, %s3623_s29 }
 0x1fe   : > { %v2766_v16 = vpop.f32.mrb[20].mxu1  ;;  %v4071_v31 = vpop.f32.mrb[20].mxu0 }
 0x1ff   : > { %v954_v17 = vpop.f32.mrb[21].mxu1  ;;  %v4073_v33 = vpop.f32.mrb[21].mxu0 }
 0x200   : > { %v2767_v18 = vpop.f32.mrb[22].mxu1  ;;  %v4076_v34 = vpop.f32.mrb[22].mxu0 }
 0x201   : > { %v3136_v19 = vpack.i.bf16 %v2767_v18, %v2766_v16  ;;  %v957_v20 = vpop.f32.mrb[23].mxu1  ;;  %v4079_v35 = vpop.f32.mrb[23].mxu0 }
 0x202   : > { %v3141_v22 = vpack.i.bf16 %v957_v20, %v954_v17 }
 0x203   : > { %3137 = vrot.lane.b32.xlu1 %v3136_v19, %s3623_s29 }
 0x204   : > { %3142 = vrot.lane.b32.xlu0 %v3141_v22, %s3623_s29 }
 0x206   : > { %v2770_v26 = vpop.f32.mrb[24].mxu1  ;;  %v4081_v41 = vpop.f32.mrb[24].mxu0 }
 0x207   : > { %v970_v27 = vpop.f32.mrb[25].mxu1  ;;  %v4083_v43 = vpop.f32.mrb[25].mxu0 }
 0x208   : > { %v2771_v28 = vpop.f32.mrb[26].mxu1  ;;  %v4086_v44 = vpop.f32.mrb[26].mxu0 }
 0x209   : > { %v3146_v29 = vpack.i.bf16 %v2771_v28, %v2770_v26  ;;  %v973_v30 = vpop.f32.mrb[27].mxu1  ;;  %v4089_v46 = vpop.f32.mrb[27].mxu0 }
 0x20a   : > { %v3151_v32 = vpack.i.bf16 %v973_v30, %v970_v27 }
 0x20b   : > { %3147 = vrot.lane.b32.xlu1 %v3146_v29, %s3623_s29 }
 0x20c   : > { %3152 = vrot.lane.b32.xlu0 %v3151_v32, %s3623_s29 }
 0x20e   : > { %v2774_v36 = vpop.f32.mrb[28].mxu1  ;;  %v4091_v50 = vpop.f32.mrb[28].mxu0 }
 0x20f   : > { %v986_v37 = vpop.f32.mrb[29].mxu1  ;;  %v4093_v51 = vpop.f32.mrb[29].mxu0 }
 0x210   : > { %v2775_v38 = vpop.f32.mrb[30].mxu1  ;;  %v4095_v52 = vpop.f32.mrb[30].mxu0 }
 0x211   : > { %v3161_v39 = vpack.i.bf16 %v2775_v38, %v2774_v36  ;;  %v989_v40 = vpop.f32.mrb[31].mxu1  ;;  %v4097_v53 = vpop.f32.mrb[31].mxu0 }
 0x212   : > { %v3156_v42 = vpack.i.bf16 %v989_v40, %v986_v37 }
 0x213   : > { %3162 = vrot.lane.b32.xlu1 %v3161_v39, %s3623_s29 }
 0x214   : > { %3157 = vrot.lane.b32.xlu0 %v3156_v42, %s3623_s29 }
 0x24d   : > { %v3088_v54 = vpop.permute.xlu0 %3087 }
 0x24e   : > { %v3090_v56 = vunpack.i.h.bf16 %v3088_v54  ;;  %v3089_v60 = vunpack.i.l.bf16 %v3088_v54 }
 0x250   : > { %v1132_v61 = vsel %vm1129_vm1, %v4021_v45, %v3089_v60  ;;  %v1133_v62 = vsel %vm1129_vm1, %v4026_v48, %v3090_v56 }
 0x251   : > { %v1163_v63 = vpack.c.bf16 %v1133_v62, %v1132_v61  ;;  %v3093_v0 = vpop.permute.xlu0 %3092 }
 0x252   : > { %v3095_v2 = vunpack.i.h.bf16 %v3093_v0  ;;  %v3094_v6 = vunpack.i.l.bf16 %v3093_v0 }
 0x253   : > { %1179 = vst [vmem:[#allocation2 + $0x8] sm:$0xff] %v1163_v63 }
 0x254   : > { %v1130_v7 = vsel %vm1129_vm1, %v4023_v47, %v3094_v6  ;;  %v1131_v8 = vsel %vm1129_vm1, %v4028_v49, %v3095_v2 }
 0x255   : > { %v1162_v9 = vpack.c.bf16 %v1131_v8, %v1130_v7  ;;  %v3098_v10 = vpop.permute.xlu1 %3097 }
 0x256   : > { %v3100_v12 = vunpack.i.h.bf16 %v3098_v10  ;;  %v3099_v16 = vunpack.i.l.bf16 %v3098_v10 }
 0x257   : > { %1178 = vst [vmem:[#allocation2] sm:$0xff] %v1162_v9 }
 0x258   : > { %v1136_v45 = vsel %vm1129_vm1, %v4031_v55, %v3099_v16  ;;  %v1137_v48 = vsel %vm1129_vm1, %v4036_v58, %v3100_v12 }
 0x259   : > { %v1165_v17 = vpack.c.bf16 %v1137_v48, %v1136_v45  ;;  %v3103_v18 = vpop.permute.xlu1 %3102 }
 0x25a   : > { %v3105_v19 = vunpack.i.h.bf16 %v3103_v18  ;;  %v3104_v20 = vunpack.i.l.bf16 %v3103_v18 }
 0x25b   : > { %1181 = vst [vmem:[#allocation2 + $0x18] sm:$0xff] %v1165_v17 }
 0x25c   : > { %v1134_v47 = vsel %vm1129_vm1, %v4033_v57, %v3104_v20  ;;  %v1135_v49 = vsel %vm1129_vm1, %v4039_v59, %v3105_v19 }
 0x25d   : > { %v1164_v22 = vpack.c.bf16 %v1135_v49, %v1134_v47  ;;  %v3108_v26 = vpop.permute.xlu1 %3107 }
 0x25e   : > { %v3110_v27 = vunpack.i.h.bf16 %v3108_v26  ;;  %v3109_v28 = vunpack.i.l.bf16 %v3108_v26  ;;  %v3113_v29 = vpop.permute.xlu0 %3112 }
 0x25f   : > { %1180 = vst [vmem:[#allocation2 + $0x10] sm:$0xff] %v1164_v22  ;;  %v3115_v55 = vunpack.i.h.bf16 %v3113_v29  ;;  %v3114_v30 = vunpack.i.l.bf16 %v3113_v29 }
 0x260   : > { %v1140_v58 = vsel %vm1129_vm1, %v4041_v1, %v3109_v28  ;;  %v1141_v32 = vsel %vm1129_vm1, %v4046_v4, %v3110_v27 }
 0x261   : > { %v1167_v36 = vpack.c.bf16 %v1141_v32, %v1140_v58  ;;  %v1138_v57 = vsel %vm1129_vm1, %v4043_v3, %v3114_v30  ;;  %v1139_v59 = vsel %vm1129_vm1, %v4049_v5, %v3115_v55 }
 0x262   : > { %v1166_v37 = vpack.c.bf16 %v1139_v59, %v1138_v57 }
 0x263   : > { %1183 = vst [vmem:[#allocation2 + $0x28] sm:$0xff] %v1167_v36 }
 0x264   : > { %1182 = vst [vmem:[#allocation2 + $0x20] sm:$0xff] %v1166_v37 }
 0x265   : > { %v3118_v38 = vpop.permute.xlu1 %3117 }
 0x266   : > { %v3120_v39 = vunpack.i.h.bf16 %v3118_v38  ;;  %v3119_v40 = vunpack.i.l.bf16 %v3118_v38  ;;  %v3123_v42 = vpop.permute.xlu0 %3122 }
 0x267   : > { %v3125_v54 = vunpack.i.h.bf16 %v3123_v42  ;;  %v3124_v56 = vunpack.i.l.bf16 %v3123_v42 }
 0x268   : > { %v1144_v1 = vsel %vm1129_vm1, %v4051_v11, %v3119_v40  ;;  %v1145_v4 = vsel %vm1129_vm1, %v4056_v14, %v3120_v39 }
 0x269   : > { %v1169_v60 = vpack.c.bf16 %v1145_v4, %v1144_v1  ;;  %v1142_v3 = vsel %vm1129_vm1, %v4053_v13, %v3124_v56  ;;  %v1143_v5 = vsel %vm1129_vm1, %v4059_v15, %v3125_v54 }
 0x26a   : > { %v1168_v61 = vpack.c.bf16 %v1143_v5, %v1142_v3 }
 0x26b   : > { %1185 = vst [vmem:[#allocation2 + $0x38] sm:$0xff] %v1169_v60 }
 0x26c   : > { %1184 = vst [vmem:[#allocation2 + $0x30] sm:$0xff] %v1168_v61 }
 0x26d   : > { %v3128_v62 = vpop.permute.xlu1 %3127 }
 0x26e   : > { %v3130_v63 = vunpack.i.h.bf16 %v3128_v62  ;;  %v3129_v0 = vunpack.i.l.bf16 %v3128_v62  ;;  %v3133_v2 = vpop.permute.xlu0 %3132 }
 0x26f   : > { %v3135_v6 = vunpack.i.h.bf16 %v3133_v2  ;;  %v3134_v7 = vunpack.i.l.bf16 %v3133_v2 }
 0x270   : > { %v1148_v11 = vsel %vm1129_vm1, %v4061_v21, %v3129_v0  ;;  %v1149_v14 = vsel %vm1129_vm1, %v4066_v24, %v3130_v63 }
 0x271   : > { %v1171_v8 = vpack.c.bf16 %v1149_v14, %v1148_v11  ;;  %v1146_v13 = vsel %vm1129_vm1, %v4063_v23, %v3134_v7  ;;  %v1147_v15 = vsel %vm1129_vm1, %v4069_v25, %v3135_v6 }
 0x272   : > { %v1170_v9 = vpack.c.bf16 %v1147_v15, %v1146_v13 }
 0x273   : > { %1187 = vst [vmem:[#allocation2 + $0x48] sm:$0xff] %v1171_v8 }
 0x274   : > { %1186 = vst [vmem:[#allocation2 + $0x40] sm:$0xff] %v1170_v9 }
 0x275   : > { %v3138_v10 = vpop.permute.xlu1 %3137 }
 0x276   : > { %v3140_v12 = vunpack.i.h.bf16 %v3138_v10  ;;  %v3139_v16 = vunpack.i.l.bf16 %v3138_v10  ;;  %v3143_v45 = vpop.permute.xlu0 %3142 }
 0x277   : > { %v3145_v48 = vunpack.i.h.bf16 %v3143_v45  ;;  %v3144_v17 = vunpack.i.l.bf16 %v3143_v45 }
 0x278   : > { %v1152_v21 = vsel %vm1129_vm1, %v4071_v31, %v3139_v16  ;;  %v1153_v24 = vsel %vm1129_vm1, %v4076_v34, %v3140_v12 }
 0x279   : > { %v1173_v18 = vpack.c.bf16 %v1153_v24, %v1152_v21  ;;  %v1150_v23 = vsel %vm1129_vm1, %v4073_v33, %v3144_v17  ;;  %v1151_v25 = vsel %vm1129_vm1, %v4079_v35, %v3145_v48 }
 0x27a   : > { %v1172_v19 = vpack.c.bf16 %v1151_v25, %v1150_v23 }
 0x27b   : > { %1189 = vst [vmem:[#allocation2 + $0x58] sm:$0xff] %v1173_v18 }
 0x27c   : > { %1188 = vst [vmem:[#allocation2 + $0x50] sm:$0xff] %v1172_v19 }
 0x27d   : > { %v3148_v20 = vpop.permute.xlu1 %3147 }
 0x27e   : > { %v3150_v47 = vunpack.i.h.bf16 %v3148_v20  ;;  %v3149_v49 = vunpack.i.l.bf16 %v3148_v20  ;;  %v3153_v22 = vpop.permute.xlu0 %3152 }
 0x27f   : > { %v3155_v26 = vunpack.i.h.bf16 %v3153_v22  ;;  %v3154_v27 = vunpack.i.l.bf16 %v3153_v22 }
 0x280   : > { %v1156_v31 = vsel %vm1129_vm1, %v4081_v41, %v3149_v49  ;;  %v1157_v34 = vsel %vm1129_vm1, %v4086_v44, %v3150_v47 }
 0x281   : > { %v1175_v28 = vpack.c.bf16 %v1157_v34, %v1156_v31  ;;  %v1154_v33 = vsel %vm1129_vm1, %v4083_v43, %v3154_v27  ;;  %v1155_v35 = vsel %vm1129_vm1, %v4089_v46, %v3155_v26 }
 0x282   : > { %v1174_v29 = vpack.c.bf16 %v1155_v35, %v1154_v33 }
 0x283   : > { %1191 = vst [vmem:[#allocation2 + $0x68] sm:$0xff] %v1175_v28 }
 0x284   : > { %1190 = vst [vmem:[#allocation2 + $0x60] sm:$0xff] %v1174_v29 }
 0x285   : > { %v3163_v55 = vpop.permute.xlu1 %3162 }
 0x286   : > { %v3165_v30 = vunpack.i.h.bf16 %v3163_v55  ;;  %v3164_v58 = vunpack.i.l.bf16 %v3163_v55  ;;  %v3158_v32 = vpop.permute.xlu0 %3157 }
 0x287   : > { %v3160_v36 = vunpack.i.h.bf16 %v3158_v32  ;;  %v3159_v57 = vunpack.i.l.bf16 %v3158_v32 }
 0x288   : > { %v1160_v41 = vsel %vm1129_vm1, %v4091_v50, %v3164_v58  ;;  %v1161_v44 = vsel %vm1129_vm1, %v4095_v52, %v3165_v30 }
 0x289   : > { %v1177_v59 = vpack.c.bf16 %v1161_v44, %v1160_v41  ;;  %v1158_v43 = vsel %vm1129_vm1, %v4093_v51, %v3159_v57  ;;  %v1159_v46 = vsel %vm1129_vm1, %v4097_v53, %v3160_v36 }
 0x28a   : > { %v1176_v37 = vpack.c.bf16 %v1159_v46, %v1158_v43 }
 0x28b   : > { %1193 = vst [vmem:[#allocation2 + $0x78] sm:$0xff] %v1177_v59 }
 0x28c   : > { %1192 = vst [vmem:[#allocation2 + $0x70] sm:$0xff] %v1176_v37 }
 0x28d PF: > { %s4562_s24 = sld [smem:[#allocation26_spill]] }
 0x293   : > { %p2555_p11 = scmp.ne.s32.totalorder %s4562_s24, 1 }
 0x294   : > { %v1198_v38 = vld [vmem:[#allocation3] sm:$0xff] (!%p2555_p11)  ;;  %v1200_v39 = vld [vmem:[#allocation3 + $0x10] sm:$0xff] (!%p2555_p11)  ;;  %s3624_s1 = smov (!%p2555_p11), 64   ;;  %vm1246_vm2 = vcmask (!%p2555_p11), 523264   ;;  %v1199_v50 = vld [vmem:[#allocation3 + $0x8] sm:$0xff] (!%p2555_p11) }
 0x295   : > { %1197 = sbr.rel (%p2555_p11) target bundleno = 1174 (0x496), region = 80  ;;  %1472 = vrot.lane.b32.xlu0 (!%p2555_p11), %v1198_v38, %s3624_s1  ;;  %1476 = vrot.lane.b32.xlu1 (!%p2555_p11), %v1200_v39, %s3624_s1  ;;  %v1201_v51 = vld [vmem:[#allocation3 + $0x18] sm:$0xff] (!%p2555_p11)  ;;  %v1202_v52 = vld [vmem:[#allocation3 + $0x20] sm:$0xff] (!%p2555_p11)  ;;  %v1203_v53 = vld [vmem:[#allocation3 + $0x28] sm:$0xff] (!%p2555_p11) }
 0x296   : > { %2784 = vmatprep.mubr.msk.bf16.mxu0 (!%p2555_p11), %vm1246_vm2, %v1198_v38  ;;  %v3280_v40 = vld [vmem:[#allocation11] sm:$0xff] (!%p2555_p11)   ;;  %v3281_v42 = vld [vmem:[#allocation11 + $0x8] sm:$0xff] (!%p2555_p11)   ;;  %v3282_v1 = vld [vmem:[#allocation11 + $0x10] sm:$0xff] (!%p2555_p11)  }
 0x297   : > { %2816 = vmatprep.subr.bf16.mxu1 (!%p2555_p11), %v3280_v40  ;;  %2776 = vmatprep.subr.bf16.mxu0 (!%p2555_p11), %v3280_v40  ;;  %v1204_v54 = vld [vmem:[#allocation3 + $0x30] sm:$0xff] (!%p2555_p11)  ;;  %v1205_v56 = vld [vmem:[#allocation3 + $0x38] sm:$0xff] (!%p2555_p11)  ;;  %v1206_v4 = vld [vmem:[#allocation3 + $0x40] sm:$0xff] (!%p2555_p11) }
 0x298   : > { %2817 = vmatpush3.bf16.msra.mxu1 (!%p2555_p11), %v3280_v40  ;;  %2777 = vmatpush3.bf16.msra.mxu0 (!%p2555_p11), %v3280_v40  ;;  %v1207_v60 = vld [vmem:[#allocation3 + $0x48] sm:$0xff] (!%p2555_p11)  ;;  %v1208_v5 = vld [vmem:[#allocation3 + $0x50] sm:$0xff] (!%p2555_p11)  ;;  %v1209_v61 = vld [vmem:[#allocation3 + $0x58] sm:$0xff] (!%p2555_p11) }
 0x299   : > { %1474 = vrot.lane.b32.xlu0 (!%p2555_p11), %v1199_v50, %s3624_s1  ;;  %1478 = vrot.lane.b32.xlu1 (!%p2555_p11), %v1201_v51, %s3624_s1  ;;  %v3283_v3 = vld [vmem:[#allocation11 + $0x18] sm:$0xff] (!%p2555_p11)   ;;  %v1210_v62 = vld [vmem:[#allocation3 + $0x60] sm:$0xff] (!%p2555_p11)  ;;  %v1212_v0 = vld [vmem:[#allocation3 + $0x70] sm:$0xff] (!%p2555_p11) }
 0x29a   : > { %2818 = vmatprep.subr.bf16.mxu1 (!%p2555_p11), %v3281_v42  ;;  %2778 = vmatprep.subr.bf16.mxu0 (!%p2555_p11), %v3281_v42  ;;  %v1211_v63 = vld [vmem:[#allocation3 + $0x68] sm:$0xff] (!%p2555_p11)  ;;  %v1213_v2 = vld [vmem:[#allocation3 + $0x78] sm:$0xff] (!%p2555_p11) }
 0x29c   : > { %2819 = vmatpush3.bf16.msra.mxu1 %v3281_v42  ;;  %2779 = vmatpush3.bf16.msra.mxu0 %v3281_v42 }
 0x29d   : > { %1480 = vrot.lane.b32.xlu0 %v1202_v52, %s3624_s1  ;;  %1482 = vrot.lane.b32.xlu1 %v1203_v53, %s3624_s1 }
 0x29e   : > { %2820 = vmatprep.subr.bf16.mxu1 %v3282_v1  ;;  %2780 = vmatprep.subr.bf16.mxu0 %v3282_v1 }
 0x2a0   : > { %2821 = vmatpush3.bf16.msra.mxu1 %v3282_v1  ;;  %2781 = vmatpush3.bf16.msra.mxu0 %v3282_v1 }
 0x2a1   : > { %1484 = vrot.lane.b32.xlu0 %v1204_v54, %s3624_s1  ;;  %1486 = vrot.lane.b32.xlu1 %v1205_v56, %s3624_s1 }
 0x2a2   : > { %2822 = vmatprep.subr.bf16.mxu1 %v3283_v3  ;;  %2782 = vmatprep.subr.bf16.mxu0 %v3283_v3 }
 0x2a4   : > { %2823 = vmatpush3.bf16.msra.mxu1 %v3283_v3  ;;  %2783 = vmatpush3.bf16.msra.mxu0 %v3283_v3 }
 0x2a5   : > { %1488 = vrot.lane.b32.xlu0 %v1206_v4, %s3624_s1  ;;  %1490 = vrot.lane.b32.xlu1 %v1207_v60, %s3624_s1 }
 0x2a7   : > { %2785 = vmatmul.mubr.msk.bf16.vlgmr.msra.gmra.mrb[0].mxu0 %vm1246_vm2, %v1199_v50 }
 0x2a8   : > { %2788 = vmatprep.mubr.msk.bf16.mxu0 %vm1246_vm2, %v1200_v39 }
 0x2a9   : > { %1492 = vrot.lane.b32.xlu0 %v1208_v5, %s3624_s1  ;;  %1494 = vrot.lane.b32.xlu1 %v1209_v61, %s3624_s1 }
 0x2ad   : > { %1496 = vrot.lane.b32.xlu0 %v1210_v62, %s3624_s1  ;;  %1498 = vrot.lane.b32.xlu1 %v1211_v63, %s3624_s1 }
 0x2af   : > { %2789 = vmatmul.mubr.msk.bf16.gmra.mrb[4].mxu0 %vm1246_vm2, %v1201_v51 }
 0x2b0   : > { %2792 = vmatprep.mubr.msk.bf16.mxu0 %vm1246_vm2, %v1202_v52 }
 0x2b1   : > { %1500 = vrot.lane.b32.xlu0 %v1212_v0, %s3624_s1  ;;  %1502 = vrot.lane.b32.xlu1 %v1213_v2, %s3624_s1 }
 0x2b7   : > { %2793 = vmatmul.mubr.msk.bf16.gmra.mrb[8].mxu0 %vm1246_vm2, %v1203_v53 }
 0x2b8   : > { %2796 = vmatprep.mubr.msk.bf16.mxu0 %vm1246_vm2, %v1204_v54 }
 0x2bf   : > { %2797 = vmatmul.mubr.msk.bf16.gmra.mrb[12].mxu0 %vm1246_vm2, %v1205_v56 }
 0x2c0   : > { %2800 = vmatprep.mubr.msk.bf16.mxu0 %vm1246_vm2, %v1206_v4 }
 0x2c7   : > { %2801 = vmatmul.mubr.msk.bf16.gmra.mrb[16].mxu0 %vm1246_vm2, %v1207_v60 }
 0x2c8   : > { %2804 = vmatprep.mubr.msk.bf16.mxu0 %vm1246_vm2, %v1208_v5 }
 0x2cf   : > { %2805 = vmatmul.mubr.msk.bf16.gmra.mrb[20].mxu0 %vm1246_vm2, %v1209_v61 }
 0x2d0   : > { %2808 = vmatprep.mubr.msk.bf16.mxu0 %vm1246_vm2, %v1210_v62 }
 0x2d7   : > { %2809 = vmatmul.mubr.msk.bf16.gmra.mrb[24].mxu0 %vm1246_vm2, %v1211_v63 }
 0x2d8   : > { %2812 = vmatprep.mubr.msk.bf16.mxu0 %vm1246_vm2, %v1212_v0 }
 0x2df   : > { %2813 = vmatmul.mubr.msk.bf16.gmra.mrb[28].mxu0 %vm1246_vm2, %v1213_v2 }
 0x307   : > { %v1473_v6 = vpop.permute.xlu0 %1472  ;;  %v1477_v7 = vpop.permute.xlu1 %1476 }
 0x308   : > { %2824 = vmatprep.mubr.msk.bf16.mxu1 %vm1246_vm2, %v1473_v6 }
 0x30b   : > { %v1475_v11 = vpop.permute.xlu0 %1474  ;;  %v1479_v14 = vpop.permute.xlu1 %1478 }
 0x30c   : > { %2825 = vmatmul.mubr.msk.bf16.vlgmr.msra.gmra.mrb[0].mxu1 %vm1246_vm2, %v1475_v11 }
 0x30d   : > { %2828 = vmatprep.mubr.msk.bf16.mxu1 %vm1246_vm2, %v1477_v7 }
 0x30f   : > { %v1481_v8 = vpop.permute.xlu0 %1480  ;;  %v1483_v13 = vpop.permute.xlu1 %1482 }
 0x313   : > { %v1485_v15 = vpop.permute.xlu0 %1484  ;;  %v1487_v9 = vpop.permute.xlu1 %1486 }
 0x314   : > { %2829 = vmatmul.mubr.msk.bf16.gmra.mrb[4].mxu1 %vm1246_vm2, %v1479_v14 }
 0x315   : > { %2832 = vmatprep.mubr.msk.bf16.mxu1 %vm1246_vm2, %v1481_v8 }
 0x317   : > { %v1489_v10 = vpop.permute.xlu0 %1488  ;;  %v1491_v12 = vpop.permute.xlu1 %1490 }
 0x31b   : > { %v1493_v16 = vpop.permute.xlu0 %1492  ;;  %v1495_v45 = vpop.permute.xlu1 %1494 }
 0x31c   : > { %2833 = vmatmul.mubr.msk.bf16.gmra.mrb[8].mxu1 %vm1246_vm2, %v1483_v13 }
 0x31d   : > { %2836 = vmatprep.mubr.msk.bf16.mxu1 %vm1246_vm2, %v1485_v15 }
 0x31f   : > { %v1497_v48 = vpop.permute.xlu0 %1496  ;;  %v1499_v17 = vpop.permute.xlu1 %1498 }
 0x323   : > { %v1501_v21 = vpop.permute.xlu0 %1500  ;;  %v1503_v24 = vpop.permute.xlu1 %1502 }
 0x324   : > { %2837 = vmatmul.mubr.msk.bf16.gmra.mrb[12].mxu1 %vm1246_vm2, %v1487_v9 }
 0x325   : > { %2840 = vmatprep.mubr.msk.bf16.mxu1 %vm1246_vm2, %v1489_v10 }
 0x32c   : > { %2841 = vmatmul.mubr.msk.bf16.gmra.mrb[16].mxu1 %vm1246_vm2, %v1491_v12 }
 0x32d   : > { %2844 = vmatprep.mubr.msk.bf16.mxu1 %vm1246_vm2, %v1493_v16 }
 0x334   : > { %2845 = vmatmul.mubr.msk.bf16.gmra.mrb[20].mxu1 %vm1246_vm2, %v1495_v45 }
 0x335   : > { %2848 = vmatprep.mubr.msk.bf16.mxu1 %vm1246_vm2, %v1497_v48 }
 0x33c   : > { %2849 = vmatmul.mubr.msk.bf16.gmra.mrb[24].mxu1 %vm1246_vm2, %v1499_v17 }
 0x33d   : > { %2852 = vmatprep.mubr.msk.bf16.mxu1 %vm1246_vm2, %v1501_v21 }
 0x344   : > { %2853 = vmatmul.mubr.msk.bf16.gmra.mrb[28].mxu1 %vm1246_vm2, %v1503_v24 }
 0x37a   : > { %v4212_v18 = vpop.f32.mrb[0].mxu0 }
 0x37b   : > { %v4214_v23 = vpop.f32.mrb[1].mxu0 }
 0x37c   : > { %v4216_v25 = vpop.f32.mrb[2].mxu0 }
 0x37d   : > { %v4218_v19 = vpop.f32.mrb[3].mxu0 }
 0x382   : > { %v4220_v20 = vpop.f32.mrb[4].mxu0 }
 0x383   : > { %v4222_v47 = vpop.f32.mrb[5].mxu0 }
 0x384   : > { %v4224_v49 = vpop.f32.mrb[6].mxu0 }
 0x385   : > { %v4226_v22 = vpop.f32.mrb[7].mxu0 }
 0x38a   : > { %v4228_v35 = vpop.f32.mrb[8].mxu0 }
 0x38b   : > { %v4231_v29 = vpop.f32.mrb[9].mxu0 }
 0x38c   : > { %v4234_v55 = vpop.f32.mrb[10].mxu0 }
 0x38d   : > { %v4236_v30 = vpop.f32.mrb[11].mxu0 }
 0x392   : > { %v4238_v59 = vpop.f32.mrb[12].mxu0 }
 0x393   : > { %v4241_v43 = vpop.f32.mrb[13].mxu0 }
 0x394   : > { %v4244_v46 = vpop.f32.mrb[14].mxu0 }
 0x395   : > { %v4246_v37 = vpop.f32.mrb[15].mxu0 }
 0x39a   : > { %v4248_v40 = vpop.f32.mrb[16].mxu0 }
 0x39b   : > { %v4251_v42 = vpop.f32.mrb[17].mxu0 }
 0x39c   : > { %v4254_v54 = vpop.f32.mrb[18].mxu0 }
 0x39d   : > { %v4256_v56 = vpop.f32.mrb[19].mxu0 }
 0x3a2   : > { %v4258_v62 = vpop.f32.mrb[20].mxu0 }
 0x3a3   : > { %v4261_v63 = vpop.f32.mrb[21].mxu0 }
 0x3a4   : > { %v4264_v0 = vpop.f32.mrb[22].mxu0 }
 0x3a5   : > { %v4266_v2 = vpop.f32.mrb[23].mxu0 }
 0x3aa   : > { %v4268_v15 = vpop.f32.mrb[24].mxu0 }
 0x3ab   : > { %v4271_v9 = vpop.f32.mrb[25].mxu0 }
 0x3ac   : > { %v4274_v10 = vpop.f32.mrb[26].mxu0 }
 0x3ad   : > { %v4276_v12 = vpop.f32.mrb[27].mxu0 }
 0x3df   : > { %v2826_v26 = vpop.f32.mrb[0].mxu1 }
 0x3e0   : > { %v1586_v27 = vpop.f32.mrb[1].mxu1 }
 0x3e1   : > { %v2827_v31 = vpop.f32.mrb[2].mxu1 }
 0x3e2   : > { %v3200_v34 = vpack.i.bf16 %v2827_v31, %v2826_v26  ;;  %v1589_v28 = vpop.f32.mrb[3].mxu1  ;;  %v4278_v26 = vpop.f32.mrb[28].mxu0 }
 0x3e3   : > { %v3205_v33 = vpack.i.bf16 %v1589_v28, %v1586_v27  ;;  %v4281_v27 = vpop.f32.mrb[29].mxu0 }
 0x3e4   : > { %3201 = vrot.lane.b32.xlu1 %v3200_v34, %s3624_s1  ;;  %v4284_v31 = vpop.f32.mrb[30].mxu0 }
 0x3e5   : > { %3206 = vrot.lane.b32.xlu0 %v3205_v33, %s3624_s1  ;;  %v4286_v34 = vpop.f32.mrb[31].mxu0 }
 0x3e7   : > { %v2830_v58 = vpop.f32.mrb[4].mxu1 }
 0x3e8   : > { %v1602_v32 = vpop.f32.mrb[5].mxu1 }
 0x3e9   : > { %v2831_v36 = vpop.f32.mrb[6].mxu1 }
 0x3ea   : > { %v3210_v57 = vpack.i.bf16 %v2831_v36, %v2830_v58  ;;  %v1605_v41 = vpop.f32.mrb[7].mxu1 }
 0x3eb   : > { %v3215_v44 = vpack.i.bf16 %v1605_v41, %v1602_v32 }
 0x3ec   : > { %3211 = vrot.lane.b32.xlu1 %v3210_v57, %s3624_s1 }
 0x3ed   : > { %3216 = vrot.lane.b32.xlu0 %v3215_v44, %s3624_s1 }
 0x3ef   : > { %v2834_v38 = vpop.f32.mrb[8].mxu1 }
 0x3f0   : > { %v1618_v39 = vpop.f32.mrb[9].mxu1 }
 0x3f1   : > { %v2835_v50 = vpop.f32.mrb[10].mxu1 }
 0x3f2   : > { %v3220_v51 = vpack.i.bf16 %v2835_v50, %v2834_v38  ;;  %v1621_v52 = vpop.f32.mrb[11].mxu1 }
 0x3f3   : > { %v3225_v53 = vpack.i.bf16 %v1621_v52, %v1618_v39 }
 0x3f4   : > { %3221 = vrot.lane.b32.xlu1 %v3220_v51, %s3624_s1 }
 0x3f5   : > { %3226 = vrot.lane.b32.xlu0 %v3225_v53, %s3624_s1 }
 0x3f7   : > { %v2838_v1 = vpop.f32.mrb[12].mxu1 }
 0x3f8   : > { %v1634_v4 = vpop.f32.mrb[13].mxu1 }
 0x3f9   : > { %v2839_v60 = vpop.f32.mrb[14].mxu1 }
 0x3fa   : > { %v3230_v3 = vpack.i.bf16 %v2839_v60, %v2838_v1  ;;  %v1637_v5 = vpop.f32.mrb[15].mxu1 }
 0x3fb   : > { %v3235_v61 = vpack.i.bf16 %v1637_v5, %v1634_v4 }
 0x3fc   : > { %3231 = vrot.lane.b32.xlu1 %v3230_v3, %s3624_s1 }
 0x3fd   : > { %3236 = vrot.lane.b32.xlu0 %v3235_v61, %s3624_s1 }
 0x3ff   : > { %v2842_v6 = vpop.f32.mrb[16].mxu1 }
 0x400   : > { %v1650_v7 = vpop.f32.mrb[17].mxu1 }
 0x401   : > { %v2843_v11 = vpop.f32.mrb[18].mxu1 }
 0x402   : > { %v3240_v14 = vpack.i.bf16 %v2843_v11, %v2842_v6  ;;  %v1653_v8 = vpop.f32.mrb[19].mxu1 }
 0x403   : > { %v3245_v13 = vpack.i.bf16 %v1653_v8, %v1650_v7 }
 0x404   : > { %3241 = vrot.lane.b32.xlu1 %v3240_v14, %s3624_s1 }
 0x405   : > { %3246 = vrot.lane.b32.xlu0 %v3245_v13, %s3624_s1 }
 0x407   : > { %v2846_v16 = vpop.f32.mrb[20].mxu1 }
 0x408   : > { %v1666_v45 = vpop.f32.mrb[21].mxu1 }
 0x409   : > { %v2847_v48 = vpop.f32.mrb[22].mxu1 }
 0x40a   : > { %v3250_v17 = vpack.i.bf16 %v2847_v48, %v2846_v16  ;;  %v1669_v21 = vpop.f32.mrb[23].mxu1 }
 0x40b   : > { %v3255_v24 = vpack.i.bf16 %v1669_v21, %v1666_v45 }
 0x40c   : > { %3251 = vrot.lane.b32.xlu1 %v3250_v17, %s3624_s1 }
 0x40d   : > { %3256 = vrot.lane.b32.xlu0 %v3255_v24, %s3624_s1 }
 0x40f   : > { %v2850_v28 = vpop.f32.mrb[24].mxu1 }
 0x410   : > { %v1682_v33 = vpop.f32.mrb[25].mxu1 }
 0x411   : > { %v2851_v58 = vpop.f32.mrb[26].mxu1 }
 0x412   : > { %v3260_v32 = vpack.i.bf16 %v2851_v58, %v2850_v28  ;;  %v1685_v36 = vpop.f32.mrb[27].mxu1 }
 0x413   : > { %v3265_v57 = vpack.i.bf16 %v1685_v36, %v1682_v33 }
 0x414   : > { %3261 = vrot.lane.b32.xlu1 %v3260_v32, %s3624_s1 }
 0x415   : > { %3266 = vrot.lane.b32.xlu0 %v3265_v57, %s3624_s1 }
 0x417   : > { %v2854_v41 = vpop.f32.mrb[28].mxu1 }
 0x418   : > { %v1698_v44 = vpop.f32.mrb[29].mxu1 }
 0x419   : > { %v2855_v38 = vpop.f32.mrb[30].mxu1 }
 0x41a   : > { %v3275_v39 = vpack.i.bf16 %v2855_v38, %v2854_v41  ;;  %v1701_v50 = vpop.f32.mrb[31].mxu1 }
 0x41b   : > { %v3270_v51 = vpack.i.bf16 %v1701_v50, %v1698_v44 }
 0x41c   : > { %3276 = vrot.lane.b32.xlu1 %v3275_v39, %s3624_s1 }
 0x41d   : > { %3271 = vrot.lane.b32.xlu0 %v3270_v51, %s3624_s1 }
 0x456   : > { %v3202_v52 = vpop.permute.xlu1 %3201 }
 0x457   : > { %v3204_v53 = vunpack.i.h.bf16 %v3202_v52  ;;  %v3203_v1 = vunpack.i.l.bf16 %v3202_v52  ;;  %v3207_v4 = vpop.permute.xlu0 %3206 }
 0x458   : > { %v3209_v60 = vunpack.i.h.bf16 %v3207_v4  ;;  %v3208_v3 = vunpack.i.l.bf16 %v3207_v4 }
 0x459   : > { %v1843_v5 = vsel %vm1246_vm2, %v4212_v18, %v3203_v1  ;;  %v1844_v61 = vsel %vm1246_vm2, %v4216_v25, %v3204_v53 }
 0x45a   : > { %v1874_v6 = vpack.c.bf16 %v1844_v61, %v1843_v5  ;;  %v1841_v7 = vsel %vm1246_vm2, %v4214_v23, %v3208_v3  ;;  %v1842_v11 = vsel %vm1246_vm2, %v4218_v19, %v3209_v60 }
 0x45b   : > { %v1873_v14 = vpack.c.bf16 %v1842_v11, %v1841_v7 }
 0x45c   : > { %1890 = vst [vmem:[#allocation2 + $0x8] sm:$0xff] %v1874_v6 }
 0x45d   : > { %1889 = vst [vmem:[#allocation2] sm:$0xff] %v1873_v14 }
 0x45e   : > { %v3212_v8 = vpop.permute.xlu1 %3211 }
 0x45f   : > { %v3214_v13 = vunpack.i.h.bf16 %v3212_v8  ;;  %v3213_v16 = vunpack.i.l.bf16 %v3212_v8  ;;  %v3217_v45 = vpop.permute.xlu0 %3216 }
 0x460   : > { %v3219_v48 = vunpack.i.h.bf16 %v3217_v45  ;;  %v3218_v17 = vunpack.i.l.bf16 %v3217_v45 }
 0x461   : > { %v1847_v18 = vsel %vm1246_vm2, %v4220_v20, %v3213_v16  ;;  %v1848_v25 = vsel %vm1246_vm2, %v4224_v49, %v3214_v13 }
 0x462   : > { %v1876_v21 = vpack.c.bf16 %v1848_v25, %v1847_v18  ;;  %v1845_v23 = vsel %vm1246_vm2, %v4222_v47, %v3218_v17  ;;  %v1846_v19 = vsel %vm1246_vm2, %v4226_v22, %v3219_v48 }
 0x463   : > { %v1875_v24 = vpack.c.bf16 %v1846_v19, %v1845_v23 }
 0x464   : > { %1892 = vst [vmem:[#allocation2 + $0x18] sm:$0xff] %v1876_v21 }
 0x465   : > { %1891 = vst [vmem:[#allocation2 + $0x10] sm:$0xff] %v1875_v24 }
 0x466   : > { %v3222_v28 = vpop.permute.xlu1 %3221 }
 0x467   : > { %v3224_v33 = vunpack.i.h.bf16 %v3222_v28  ;;  %v3223_v58 = vunpack.i.l.bf16 %v3222_v28  ;;  %v3227_v32 = vpop.permute.xlu0 %3226 }
 0x468   : > { %v3229_v36 = vunpack.i.h.bf16 %v3227_v32  ;;  %v3228_v57 = vunpack.i.l.bf16 %v3227_v32 }
 0x469   : > { %v1851_v20 = vsel %vm1246_vm2, %v4228_v35, %v3223_v58  ;;  %v1852_v49 = vsel %vm1246_vm2, %v4234_v55, %v3224_v33 }
 0x46a   : > { %v1878_v41 = vpack.c.bf16 %v1852_v49, %v1851_v20  ;;  %v1849_v47 = vsel %vm1246_vm2, %v4231_v29, %v3228_v57  ;;  %v1850_v22 = vsel %vm1246_vm2, %v4236_v30, %v3229_v36 }
 0x46b   : > { %v1877_v44 = vpack.c.bf16 %v1850_v22, %v1849_v47 }
 0x46c   : > { %1894 = vst [vmem:[#allocation2 + $0x28] sm:$0xff] %v1878_v41 }
 0x46d   : > { %1893 = vst [vmem:[#allocation2 + $0x20] sm:$0xff] %v1877_v44 }
 0x46e   : > { %v3232_v38 = vpop.permute.xlu1 %3231 }
 0x46f   : > { %v3234_v39 = vunpack.i.h.bf16 %v3232_v38  ;;  %v3233_v50 = vunpack.i.l.bf16 %v3232_v38  ;;  %v3237_v51 = vpop.permute.xlu0 %3236 }
 0x470   : > { %v3239_v52 = vunpack.i.h.bf16 %v3237_v51  ;;  %v3238_v53 = vunpack.i.l.bf16 %v3237_v51 }
 0x471   : > { %v1855_v35 = vsel %vm1246_vm2, %v4238_v59, %v3233_v50  ;;  %v1856_v55 = vsel %vm1246_vm2, %v4244_v46, %v3234_v39 }
 0x472   : > { %v1880_v1 = vpack.c.bf16 %v1856_v55, %v1855_v35  ;;  %v1853_v29 = vsel %vm1246_vm2, %v4241_v43, %v3238_v53  ;;  %v1854_v30 = vsel %vm1246_vm2, %v4246_v37, %v3239_v52 }
 0x473   : > { %v1879_v4 = vpack.c.bf16 %v1854_v30, %v1853_v29 }
 0x474   : > { %1896 = vst [vmem:[#allocation2 + $0x38] sm:$0xff] %v1880_v1 }
 0x475   : > { %1895 = vst [vmem:[#allocation2 + $0x30] sm:$0xff] %v1879_v4 }
 0x476   : > { %v3242_v60 = vpop.permute.xlu1 %3241 }
 0x477   : > { %v3244_v3 = vunpack.i.h.bf16 %v3242_v60  ;;  %v3243_v5 = vunpack.i.l.bf16 %v3242_v60  ;;  %v3247_v61 = vpop.permute.xlu0 %3246 }
 0x478   : > { %v3249_v6 = vunpack.i.h.bf16 %v3247_v61  ;;  %v3248_v7 = vunpack.i.l.bf16 %v3247_v61 }
 0x479   : > { %v1859_v59 = vsel %vm1246_vm2, %v4248_v40, %v3243_v5  ;;  %v1860_v46 = vsel %vm1246_vm2, %v4254_v54, %v3244_v3 }
 0x47a   : > { %v1882_v11 = vpack.c.bf16 %v1860_v46, %v1859_v59  ;;  %v1857_v43 = vsel %vm1246_vm2, %v4251_v42, %v3248_v7  ;;  %v1858_v37 = vsel %vm1246_vm2, %v4256_v56, %v3249_v6 }
 0x47b   : > { %v1881_v14 = vpack.c.bf16 %v1858_v37, %v1857_v43 }
 0x47c   : > { %1898 = vst [vmem:[#allocation2 + $0x48] sm:$0xff] %v1882_v11 }
 0x47d   : > { %1897 = vst [vmem:[#allocation2 + $0x40] sm:$0xff] %v1881_v14 }
 0x47e   : > { %v3252_v8 = vpop.permute.xlu1 %3251 }
 0x47f   : > { %v3254_v13 = vunpack.i.h.bf16 %v3252_v8  ;;  %v3253_v16 = vunpack.i.l.bf16 %v3252_v8  ;;  %v3257_v45 = vpop.permute.xlu0 %3256 }
 0x480   : > { %v3259_v48 = vunpack.i.h.bf16 %v3257_v45  ;;  %v3258_v17 = vunpack.i.l.bf16 %v3257_v45 }
 0x481   : > { %v1863_v40 = vsel %vm1246_vm2, %v4258_v62, %v3253_v16  ;;  %v1864_v54 = vsel %vm1246_vm2, %v4264_v0, %v3254_v13 }
 0x482   : > { %v1884_v18 = vpack.c.bf16 %v1864_v54, %v1863_v40  ;;  %v1861_v42 = vsel %vm1246_vm2, %v4261_v63, %v3258_v17  ;;  %v1862_v56 = vsel %vm1246_vm2, %v4266_v2, %v3259_v48 }
 0x483   : > { %v1883_v25 = vpack.c.bf16 %v1862_v56, %v1861_v42 }
 0x484   : > { %1900 = vst [vmem:[#allocation2 + $0x58] sm:$0xff] %v1884_v18 }
 0x485   : > { %1899 = vst [vmem:[#allocation2 + $0x50] sm:$0xff] %v1883_v25 }
 0x486   : > { %v3262_v21 = vpop.permute.xlu1 %3261 }
 0x487   : > { %v3264_v23 = vunpack.i.h.bf16 %v3262_v21  ;;  %v3263_v19 = vunpack.i.l.bf16 %v3262_v21  ;;  %v3267_v24 = vpop.permute.xlu0 %3266 }
 0x488   : > { %v3269_v28 = vunpack.i.h.bf16 %v3267_v24  ;;  %v3268_v33 = vunpack.i.l.bf16 %v3267_v24 }
 0x489   : > { %v1867_v62 = vsel %vm1246_vm2, %v4268_v15, %v3263_v19  ;;  %v1868_v0 = vsel %vm1246_vm2, %v4274_v10, %v3264_v23 }
 0x48a   : > { %v1886_v58 = vpack.c.bf16 %v1868_v0, %v1867_v62  ;;  %v1865_v63 = vsel %vm1246_vm2, %v4271_v9, %v3268_v33  ;;  %v1866_v2 = vsel %vm1246_vm2, %v4276_v12, %v3269_v28 }
 0x48b   : > { %v1885_v32 = vpack.c.bf16 %v1866_v2, %v1865_v63 }
 0x48c   : > { %1902 = vst [vmem:[#allocation2 + $0x68] sm:$0xff] %v1886_v58 }
 0x48d   : > { %1901 = vst [vmem:[#allocation2 + $0x60] sm:$0xff] %v1885_v32 }
 0x48e   : > { %v3277_v36 = vpop.permute.xlu1 %3276 }
 0x48f   : > { %v3279_v57 = vunpack.i.h.bf16 %v3277_v36  ;;  %v3278_v20 = vunpack.i.l.bf16 %v3277_v36  ;;  %v3272_v49 = vpop.permute.xlu0 %3271 }
 0x490   : > { %v3274_v41 = vunpack.i.h.bf16 %v3272_v49  ;;  %v3273_v47 = vunpack.i.l.bf16 %v3272_v49 }
 0x491   : > { %v1871_v15 = vsel %vm1246_vm2, %v4278_v26, %v3278_v20  ;;  %v1872_v10 = vsel %vm1246_vm2, %v4284_v31, %v3279_v57 }
 0x492   : > { %v1888_v22 = vpack.c.bf16 %v1872_v10, %v1871_v15  ;;  %v1869_v9 = vsel %vm1246_vm2, %v4281_v27, %v3273_v47  ;;  %v1870_v12 = vsel %vm1246_vm2, %v4286_v34, %v3274_v41 }
 0x493   : > { %v1887_v44 = vpack.c.bf16 %v1870_v12, %v1869_v9 }
 0x494   : > { %1904 = vst [vmem:[#allocation2 + $0x78] sm:$0xff] %v1888_v22 }
 0x495   : > { %1903 = vst [vmem:[#allocation2 + $0x70] sm:$0xff] %v1887_v44 }
 0x496 PF: > { %s4563_s27 = sld [smem:[#allocation24_spill]] }
 0x49c   : > { %p2592_p0 = scmp.ne.s32.totalorder %s4563_s27, 0 }
 0x49d   : > { %v3625_v38 = vmov (!%p2592_p0), 0.0   ;;  %s4564_s2 = sld [smem:[#allocation26_spill]] (!%p2592_p0) }
 0x49e   : > { %1907 = sbr.rel (%p2592_p0) target bundleno = 1198 (0x4ae), region = 84  ;;  %1908 = vst [vmem:[#allocation4] sm:$0xff] (!%p2592_p0), %v3625_v38  ;;  %1909 = vst [vmem:[#allocation4 + $0x8] sm:$0xff] (!%p2592_p0), %v3625_v38 }
 0x49f   : > { %1910 = vst [vmem:[#allocation4 + $0x10] sm:$0xff] (!%p2592_p0), %v3625_v38  ;;  %1911 = vst [vmem:[#allocation4 + $0x18] sm:$0xff] (!%p2592_p0), %v3625_v38 }
 0x4a0   : > { %1912 = vst [vmem:[#allocation4 + $0x20] sm:$0xff] (!%p2592_p0), %v3625_v38  ;;  %1913 = vst [vmem:[#allocation4 + $0x28] sm:$0xff] (!%p2592_p0), %v3625_v38 }
 0x4a1   : > { %1914 = vst [vmem:[#allocation4 + $0x30] sm:$0xff] (!%p2592_p0), %v3625_v38  ;;  %1915 = vst [vmem:[#allocation4 + $0x38] sm:$0xff] (!%p2592_p0), %v3625_v38 }
 0x4a2   : > { %1916 = vst [vmem:[#allocation4 + $0x40] sm:$0xff] (!%p2592_p0), %v3625_v38  ;;  %1917 = vst [vmem:[#allocation4 + $0x48] sm:$0xff] (!%p2592_p0), %v3625_v38 }
 0x4a3   : > { %1918 = vst [vmem:[#allocation4 + $0x50] sm:$0xff] (!%p2592_p0), %v3625_v38  ;;  %1919 = vst [vmem:[#allocation4 + $0x58] sm:$0xff] (!%p2592_p0), %v3625_v38  ;;  %p2593_p3 = scmp.ne.s32.totalorder (!%p2592_p0), %s4564_s2, 0 }
 0x4a4   : > { %1920 = vst [vmem:[#allocation4 + $0x60] sm:$0xff] (!%p2592_p0), %v3625_v38  ;;  %1921 = vst [vmem:[#allocation4 + $0x68] sm:$0xff] (!%p2592_p0), %v3625_v38 }
 0x4a5   : > { %1922 = vst [vmem:[#allocation4 + $0x70] sm:$0xff] %v3625_v38  ;;  %1923 = vst [vmem:[#allocation4 + $0x78] sm:$0xff] %v3625_v38  ;;  %1927 = sbr.rel (%p2593_p3) target bundleno = 1198 (0x4ae), region = 88  ;;  %v3626_v26 = vmov (!%p2593_p3), 0.0  }
 0x4a6   : > { %1928 = vst [vmem:[%s3984_s10] sm:$0xff] (!%p2593_p3), %v3626_v26  ;;  %1929 = vst [vmem:[%s3984_s10 + $0x8] sm:$0xff] (!%p2593_p3), %v3626_v26 }
 0x4a7   : > { %1930 = vst [vmem:[%s3984_s10 + $0x10] sm:$0xff] (!%p2593_p3), %v3626_v26  ;;  %1931 = vst [vmem:[%s3984_s10 + $0x18] sm:$0xff] (!%p2593_p3), %v3626_v26 }
 0x4a8   : > { %1932 = vst [vmem:[%s3984_s10 + $0x20] sm:$0xff] (!%p2593_p3), %v3626_v26  ;;  %1933 = vst [vmem:[%s3984_s10 + $0x28] sm:$0xff] (!%p2593_p3), %v3626_v26 }
 0x4a9   : > { %1934 = vst [vmem:[%s3984_s10 + $0x30] sm:$0xff] (!%p2593_p3), %v3626_v26  ;;  %1935 = vst [vmem:[%s3984_s10 + $0x38] sm:$0xff] (!%p2593_p3), %v3626_v26 }
 0x4aa   : > { %1936 = vst [vmem:[%s3984_s10 + $0x40] sm:$0xff] (!%p2593_p3), %v3626_v26  ;;  %1937 = vst [vmem:[%s3984_s10 + $0x48] sm:$0xff] (!%p2593_p3), %v3626_v26 }
 0x4ab   : > { %1938 = vst [vmem:[%s3984_s10 + $0x50] sm:$0xff] (!%p2593_p3), %v3626_v26  ;;  %1939 = vst [vmem:[%s3984_s10 + $0x58] sm:$0xff] (!%p2593_p3), %v3626_v26 }
 0x4ac   : > { %1940 = vst [vmem:[%s3984_s10 + $0x60] sm:$0xff] %v3626_v26  ;;  %1941 = vst [vmem:[%s3984_s10 + $0x68] sm:$0xff] %v3626_v26 }
 0x4ad   : > { %1942 = vst [vmem:[%s3984_s10 + $0x70] sm:$0xff] %v3626_v26  ;;  %1943 = vst [vmem:[%s3984_s10 + $0x78] sm:$0xff] %v3626_v26 }
 0x4ae PF: > { %s4565_s3 = sld [smem:[#allocation24_spill]]  ;;  %v3284_v27 = vld [vmem:[%s3961_s20] sm:$0xff]   ;;  %v3286_v1 = vld [vmem:[%s3961_s20 + $0x8] sm:$0xff]   ;;  %v3288_v30 = vld [vmem:[%s3961_s20 + $0x10] sm:$0xff]  }
 0x4af   : > { %v3285_v31 = vld [vmem:[%s3961_s20 + $0x20] sm:$0xff]   ;;  %2872 = vmatprep.mubr.bf16.mxu0 %v3284_v27  ;;  %v3287_v29 = vld [vmem:[%s3961_s20 + $0x28] sm:$0xff]   ;;  %v3289_v4 = vld [vmem:[%s3961_s20 + $0x30] sm:$0xff]  }
 0x4b0   : > { %2880 = vmatprep.mubr.bf16.mxu1 %v3285_v31  ;;  %v3290_v60 = vld [vmem:[%s3961_s20 + $0x18] sm:$0xff]   ;;  %v1959_v5 = vld [vmem:[#allocation4 + $0x10] sm:$0xff]  ;;  %v1957_v6 = vld [vmem:[#allocation4] sm:$0xff] }
 0x4b1   : > { %v3291_v3 = vld [vmem:[%s3961_s20 + $0x38] sm:$0xff]   ;;  %v1958_v16 = vld [vmem:[#allocation4 + $0x8] sm:$0xff]  ;;  %v1963_v19 = vld [vmem:[#allocation4 + $0x30] sm:$0xff] }
 0x4b2   : > { %v1965_v7 = vld [vmem:[#allocation4 + $0x40] sm:$0xff]  ;;  %v1960_v11 = vld [vmem:[#allocation4 + $0x18] sm:$0xff]  ;;  %v1966_v45 = vld [vmem:[#allocation4 + $0x48] sm:$0xff] }
 0x4b3   : > { %v1967_v61 = vld [vmem:[#allocation4 + $0x50] sm:$0xff]  ;;  %v1968_v43 = vld [vmem:[#allocation4 + $0x58] sm:$0xff]  ;;  %v1961_v28 = vld [vmem:[#allocation4 + $0x20] sm:$0xff] }
 0x4b4   : > { %s2594_s4 = sshll.u32 %s4565_s3, 7  ;;  %v1971_v24 = vld [vmem:[#allocation4 + $0x70] sm:$0xff]  ;;  %v1969_v33 = vld [vmem:[#allocation4 + $0x60] sm:$0xff]  ;;  %v1964_v58 = vld [vmem:[#allocation4 + $0x38] sm:$0xff]  ;;  %p2604_p7 = scmp.ne.s32.totalorder %s4565_s3, 1 }
 0x4b5   : > { %s1945_s11 = sshra.s32 %s2594_s4, 4  ;;  %v1972_v63 = vld [vmem:[#allocation4 + $0x78] sm:$0xff]  ;;  %v1962_v20 = vld [vmem:[#allocation4 + $0x28] sm:$0xff]  ;;  %s4566_s20 = sld [smem:[#allocation26_spill]] (!%p2604_p7) }
 0x4b6   : > { %s2595_s28 = sshll.u32 %s1945_s11, 3  ;;  %v1970_v49 = vld [vmem:[#allocation4 + $0x68] sm:$0xff] }
 0x4b7   : > { %s4377_s13 = scalar_lea.vmem [#allocation2], %s2595_s28 }
 0x4b8   : > { %v1949_v34 = vld [vmem:[%s4377_s13] sm:$0xff]  ;;  %v1950_v39 = vld [vmem:[%s4377_s13 + $0x8] sm:$0xff]  ;;  %v1951_v50 = vld [vmem:[%s4377_s13 + $0x10] sm:$0xff] }
 0x4b9   : > { %2856 = vmatprep.subr.bf16.mxu0 %v1949_v34  ;;  %2892 = vmatprep.subr.bf16.mxu1 %v1949_v34  ;;  %v1952_v51 = vld [vmem:[%s4377_s13 + $0x18] sm:$0xff]  ;;  %v1953_v52 = vld [vmem:[%s4377_s13 + $0x20] sm:$0xff]  ;;  %v1954_v53 = vld [vmem:[%s4377_s13 + $0x28] sm:$0xff] }
 0x4ba   : > { %2857 = vmatpush3.bf16.msra.mxu0 %v1949_v34  ;;  %2900 = vmatpush3.bf16.msra.mxu1 %v1949_v34  ;;  %v1955_v35 = vld [vmem:[%s4377_s13 + $0x30] sm:$0xff]  ;;  %v1956_v55 = vld [vmem:[%s4377_s13 + $0x38] sm:$0xff] }
 0x4bb   : > { %2858 = vmatprep.subr.bf16.mxu0 %v1950_v39  ;;  %2893 = vmatprep.subr.bf16.mxu1 %v1950_v39  ;;  %p2605_p9 = scmp.ne.s32.totalorder (!%p2604_p7), %s4566_s20, 0 }
 0x4be   : > { %2859 = vmatpush3.bf16.msra.mxu0 %v1950_v39  ;;  %2901 = vmatpush3.bf16.msra.mxu1 %v1950_v39 }
 0x4bf   : > { %2860 = vmatprep.subr.bf16.mxu0 %v1951_v50  ;;  %2894 = vmatprep.subr.bf16.mxu1 %v1951_v50 }
 0x4c2   : > { %2861 = vmatpush3.bf16.msra.mxu0 %v1951_v50  ;;  %2902 = vmatpush3.bf16.msra.mxu1 %v1951_v50 }
 0x4c3   : > { %2862 = vmatprep.subr.bf16.mxu0 %v1952_v51  ;;  %2895 = vmatprep.subr.bf16.mxu1 %v1952_v51 }
 0x4c6   : > { %2863 = vmatpush3.bf16.msra.mxu0 %v1952_v51  ;;  %2903 = vmatpush3.bf16.msra.mxu1 %v1952_v51 }
 0x4c7   : > { %2864 = vmatprep.subr.bf16.mxu0 %v1953_v52  ;;  %2896 = vmatprep.subr.bf16.mxu1 %v1953_v52 }
 0x4ca   : > { %2865 = vmatpush3.bf16.msra.mxu0 %v1953_v52  ;;  %2904 = vmatpush3.bf16.msra.mxu1 %v1953_v52 }
 0x4cb   : > { %2866 = vmatprep.subr.bf16.mxu0 %v1954_v53  ;;  %2897 = vmatprep.subr.bf16.mxu1 %v1954_v53 }
 0x4ce   : > { %2867 = vmatpush3.bf16.msra.mxu0 %v1954_v53  ;;  %2905 = vmatpush3.bf16.msra.mxu1 %v1954_v53 }
 0x4cf   : > { %2868 = vmatprep.subr.bf16.mxu0 %v1955_v35  ;;  %2898 = vmatprep.subr.bf16.mxu1 %v1955_v35 }
 0x4d2   : > { %2869 = vmatpush3.bf16.msra.mxu0 %v1955_v35  ;;  %2906 = vmatpush3.bf16.msra.mxu1 %v1955_v35 }
 0x4d3   : > { %2870 = vmatprep.subr.bf16.mxu0 %v1956_v55  ;;  %2899 = vmatprep.subr.bf16.mxu1 %v1956_v55 }
 0x4d6   : > { %2871 = vmatpush3.bf16.msra.mxu0 %v1956_v55  ;;  %2907 = vmatpush3.bf16.msra.mxu1 %v1956_v55 }
 0x4d9   : > { %2873 = vmatmul.mubr.bf16.vlgmr.msra.gmra.mrb[0].mxu0 %v3286_v1  ;;  %2881 = vmatmul.mubr.bf16.vlgmr.msra.gmra.mrb[0].mxu1 %v3287_v29 }
 0x4da   : > { %2876 = vmatprep.mubr.bf16.mxu0 %v3288_v30  ;;  %2884 = vmatprep.mubr.bf16.mxu1 %v3289_v4 }
 0x4e1   : > { %2877 = vmatmul.mubr.bf16.gmra.mrb[4].mxu0 %v3290_v60  ;;  %2885 = vmatmul.mubr.bf16.gmra.mrb[4].mxu1 %v3291_v3 }
 0x5ac   : > { %v2874_v59 = vpop.f32.mrb[0].mxu0  ;;  %v2882_v46 = vpop.f32.mrb[0].mxu1 }
 0x5ad   : > { %v2136_v37 = vadd.f32 %v2874_v59, %v1959_v5  ;;  %v2144_v14 = vadd.f32 %v2882_v46, %v1967_v61  ;;  %v2071_v8 = vpop.f32.mrb[1].mxu0  ;;  %v2103_v13 = vpop.f32.mrb[1].mxu1 }
 0x5ae   : > { %v2134_v48 = vadd.f32 %v2071_v8, %v1957_v6  ;;  %v2142_v17 = vadd.f32 %v2103_v13, %v1965_v7  ;;  %v2875_v40 = vpop.f32.mrb[2].mxu0  ;;  %v2883_v54 = vpop.f32.mrb[2].mxu1 }
 0x5af   : > { %2152 = vst [vmem:[#allocation4 + $0x10] sm:$0xff] %v2136_v37  ;;  %2160 = vst [vmem:[#allocation4 + $0x50] sm:$0xff] %v2144_v14  ;;  %v2137_v18 = vadd.f32 %v2875_v40, %v1960_v11  ;;  %v2145_v42 = vadd.f32 %v2883_v54, %v1968_v43  ;;  %v2074_v56 = vpop.f32.mrb[3].mxu0  ;;  %v2106_v25 = vpop.f32.mrb[3].mxu1 }
 0x5b0   : > { %2150 = vst [vmem:[#allocation4] sm:$0xff] %v2134_v48  ;;  %2158 = vst [vmem:[#allocation4 + $0x40] sm:$0xff] %v2142_v17  ;;  %v2135_v21 = vadd.f32 %v2074_v56, %v1958_v16  ;;  %v2143_v23 = vadd.f32 %v2106_v25, %v1966_v45 }
 0x5b1   : > { %2153 = vst [vmem:[#allocation4 + $0x18] sm:$0xff] %v2137_v18  ;;  %2161 = vst [vmem:[#allocation4 + $0x58] sm:$0xff] %v2145_v42 }
 0x5b2   : > { %2151 = vst [vmem:[#allocation4 + $0x8] sm:$0xff] %v2135_v21  ;;  %2159 = vst [vmem:[#allocation4 + $0x48] sm:$0xff] %v2143_v23 }
 0x5b4   : > { %v2878_v62 = vpop.f32.mrb[4].mxu0  ;;  %v2886_v0 = vpop.f32.mrb[4].mxu1  ;;  %2169 = sbr.rel (%p2604_p7) target bundleno = 1501 (0x5dd), region = 92 }
 0x5b5   : > { %v2140_v2 = vadd.f32 %v2878_v62, %v1963_v19  ;;  %v2148_v32 = vadd.f32 %v2886_v0, %v1971_v24  ;;  %v2087_v36 = vpop.f32.mrb[5].mxu0  ;;  %v2119_v57 = vpop.f32.mrb[5].mxu1 }
 0x5b6   : > { %v2138_v41 = vadd.f32 %v2087_v36, %v1961_v28  ;;  %v2146_v47 = vadd.f32 %v2119_v57, %v1969_v33  ;;  %v2879_v15 = vpop.f32.mrb[6].mxu0  ;;  %v2887_v10 = vpop.f32.mrb[6].mxu1 }
 0x5b7   : > { %2156 = vst [vmem:[#allocation4 + $0x30] sm:$0xff] %v2140_v2  ;;  %2164 = vst [vmem:[#allocation4 + $0x70] sm:$0xff] %v2148_v32  ;;  %v2141_v22 = vadd.f32 %v2879_v15, %v1964_v58  ;;  %v2149_v9 = vadd.f32 %v2887_v10, %v1972_v63  ;;  %v2090_v12 = vpop.f32.mrb[7].mxu0  ;;  %v2122_v44 = vpop.f32.mrb[7].mxu1 }
 0x5b8   : > { %2154 = vst [vmem:[#allocation4 + $0x20] sm:$0xff] %v2138_v41  ;;  %2162 = vst [vmem:[#allocation4 + $0x60] sm:$0xff] %v2146_v47  ;;  %v2139_v38 = vadd.f32 %v2090_v12, %v1962_v20  ;;  %v2147_v26 = vadd.f32 %v2122_v44, %v1970_v49 }
 0x5b9   : > { %2157 = vst [vmem:[#allocation4 + $0x38] sm:$0xff] %v2141_v22  ;;  %2165 = vst [vmem:[#allocation4 + $0x78] sm:$0xff] %v2149_v9 }
 0x5ba   : > { %2155 = vst [vmem:[#allocation4 + $0x28] sm:$0xff] %v2139_v38  ;;  %2163 = vst [vmem:[#allocation4 + $0x68] sm:$0xff] %v2147_v26 }
 0x5bb   : > { %2173 = sbr.rel (%p2605_p9) target bundleno = 1483 (0x5cb), region = 96  ;;  %v2174_v27 = vld [vmem:[#allocation4] sm:$0xff] (!%p2605_p9)  ;;  %s4567_s16 = sld [smem:[#allocation25_spill]] (!%p2605_p9)  ;;  %v2175_v31 = vld [vmem:[#allocation4 + $0x8] sm:$0xff] (!%p2605_p9)  ;;  %v2606_v34 = vld [vmem:[#allocation13] ss:$0 sm:$0xff] (!%p2605_p9) }
 0x5bc   : > { %v2197_v39 = vadd.f32 (!%p2605_p9), %v2606_v34, %v2174_v27  ;;  %v2198_v50 = vadd.f32 (!%p2605_p9), %v2606_v34, %v2175_v31  ;;  %v2176_v51 = vld [vmem:[#allocation4 + $0x10] sm:$0xff] (!%p2605_p9)  ;;  %v2177_v52 = vld [vmem:[#allocation4 + $0x18] sm:$0xff] (!%p2605_p9)  ;;  %v2182_v6 = vld [vmem:[#allocation4 + $0x40] sm:$0xff] (!%p2605_p9) }
 0x5bd   : > { %v2199_v35 = vadd.f32 (!%p2605_p9), %v2606_v34, %v2176_v51  ;;  %v2200_v55 = vadd.f32 (!%p2605_p9), %v2606_v34, %v2177_v52  ;;  %v2183_v7 = vld [vmem:[#allocation4 + $0x48] sm:$0xff] (!%p2605_p9)  ;;  %v2184_v59 = vld [vmem:[#allocation4 + $0x50] sm:$0xff] (!%p2605_p9)  ;;  %v2185_v14 = vld [vmem:[#allocation4 + $0x58] sm:$0xff] (!%p2605_p9)  ;;  %v2205_v48 = vadd.f32 (!%p2605_p9), %v2606_v34, %v2182_v6 }
 0x5be   : > { %v2180_v30 = vld [vmem:[#allocation4 + $0x30] sm:$0xff] (!%p2605_p9)  ;;  %v2213_v60 = vmax.f32 (!%p2605_p9), %v2197_v39, 0.0  ;;  %v2214_v3 = vmax.f32 (!%p2605_p9), %v2198_v50, 0.0  ;;  %v2206_v18 = vadd.f32 (!%p2605_p9), %v2606_v34, %v2183_v7  ;;  %v2207_v42 = vadd.f32 (!%p2605_p9), %v2606_v34, %v2184_v59 }
 0x5bf   : > { %v2178_v53 = vld [vmem:[#allocation4 + $0x20] sm:$0xff] (!%p2605_p9)  ;;  %v2203_v61 = vadd.f32 (!%p2605_p9), %v2606_v34, %v2180_v30  ;;  %v2215_v46 = vmax.f32 (!%p2605_p9), %v2199_v35, 0.0  ;;  %v2216_v11 = vmax.f32 (!%p2605_p9), %v2200_v55, 0.0  ;;  %v2188_v56 = vld [vmem:[#allocation4 + $0x70] sm:$0xff] (!%p2605_p9)  ;;  %v2221_v23 = vmax.f32 (!%p2605_p9), %v2205_v48, 0.0 }
 0x5c0   : > { %v2201_v29 = vadd.f32 (!%p2605_p9), %v2606_v34, %v2178_v53  ;;  %v2181_v4 = vld [vmem:[#allocation4 + $0x38] sm:$0xff] (!%p2605_p9)  ;;  %v2186_v8 = vld [vmem:[#allocation4 + $0x60] sm:$0xff] (!%p2605_p9)  ;;  %v2230_v13 = vpack.c.bf16 (!%p2605_p9), %v2214_v3, %v2213_v60  ;;  %v2208_v19 = vadd.f32 (!%p2605_p9), %v2606_v34, %v2185_v14  ;;  %v2222_v33 = vmax.f32 (!%p2605_p9), %v2206_v18, 0.0 }
 0x5c1   : > { %s2607_s21 = sshll.u32 (!%p2605_p9), %s4567_s16, 7  ;;  %v2179_v1 = vld [vmem:[#allocation4 + $0x28] sm:$0xff] (!%p2605_p9)  ;;  %v2204_v37 = vadd.f32 (!%p2605_p9), %v2606_v34, %v2181_v4  ;;  %v2219_v45 = vmax.f32 (!%p2605_p9), %v2203_v61, 0.0  ;;  %v2231_v40 = vpack.c.bf16 (!%p2605_p9), %v2216_v11, %v2215_v46  ;;  %v2189_v25 = vld [vmem:[#allocation4 + $0x78] sm:$0xff] (!%p2605_p9)  ;;  %v2209_v24 = vadd.f32 (!%p2605_p9), %v2606_v34, %v2186_v8 }
 0x5c2   : > { %s4396_s6 = sshra.s32 %s2607_s21, 4  ;;  %v2202_v5 = vadd.f32 %v2606_v34, %v2179_v1  ;;  %v2217_v43 = vmax.f32 %v2201_v29, 0.0  ;;  %v2187_v17 = vld [vmem:[#allocation4 + $0x68] sm:$0xff]  ;;  %v2223_v62 = vmax.f32 %v2207_v42, 0.0  ;;  %v2224_v58 = vmax.f32 %v2208_v19, 0.0 }
 0x5c3   : > { %s2608_s18 = sshll.u32 %s4396_s6, 3  ;;  %v2220_v54 = vmax.f32 %v2204_v37, 0.0  ;;  %v2210_v0 = vadd.f32 %v2606_v34, %v2187_v17  ;;  %v2225_v63 = vmax.f32 %v2209_v24, 0.0  ;;  %v2211_v2 = vadd.f32 %v2606_v34, %v2188_v56 }
 0x5c4   : > { %v2218_v16 = vmax.f32 %v2202_v5, 0.0  ;;  %s2241_s29 = scalar_lea.vmem [#allocation3], %s2608_s18  ;;  %v2212_v32 = vadd.f32 %v2606_v34, %v2189_v25  ;;  %v2234_v36 = vpack.c.bf16 %v2222_v33, %v2221_v23  ;;  %v2235_v20 = vpack.c.bf16 %v2224_v58, %v2223_v62 }
 0x5c5   : > { %2242 = vst [vmem:[%s2241_s29] sm:$0xff] %v2230_v13  ;;  %2243 = vst [vmem:[%s2241_s29 + $0x8] sm:$0xff] %v2231_v40  ;;  %v2233_v28 = vpack.c.bf16 %v2220_v54, %v2219_v45  ;;  %v2226_v57 = vmax.f32 %v2210_v0, 0.0  ;;  %v2227_v49 = vmax.f32 %v2211_v2, 0.0 }
 0x5c6   : > { %v2232_v21 = vpack.c.bf16 %v2218_v16, %v2217_v43  ;;  %v2228_v41 = vmax.f32 %v2212_v32, 0.0  ;;  %2246 = vst [vmem:[%s2241_s29 + $0x20] sm:$0xff] %v2234_v36  ;;  %2247 = vst [vmem:[%s2241_s29 + $0x28] sm:$0xff] %v2235_v20 }
 0x5c7   : > { %2245 = vst [vmem:[%s2241_s29 + $0x18] sm:$0xff] %v2233_v28  ;;  %v2236_v47 = vpack.c.bf16 %v2226_v57, %v2225_v63 }
 0x5c8   : > { %2244 = vst [vmem:[%s2241_s29 + $0x10] sm:$0xff] %v2232_v21  ;;  %v2237_v15 = vpack.c.bf16 %v2228_v41, %v2227_v49 }
 0x5c9   : > { %2248 = vst [vmem:[%s2241_s29 + $0x30] sm:$0xff] %v2236_v47 }
 0x5ca   : > { %2249 = vst [vmem:[%s2241_s29 + $0x38] sm:$0xff] %v2237_v15 }
 0x5cb PF: > { %s4568_s24 = sld [smem:[#allocation26_spill]] }
 0x5d1   : > { %p2609_p2 = scmp.ne.s32.totalorder %s4568_s24, 1 }
 0x5d2   : > { %v2254_v10 = vld [vmem:[#allocation4] sm:$0xff] (!%p2609_p2)  ;;  %v2610_v22 = vld [vmem:[#allocation14] ss:$0 sm:$0xff] (!%p2609_p2)  ;;  %v2255_v9 = vld [vmem:[#allocation4 + $0x8] sm:$0xff] (!%p2609_p2) }
 0x5d3   : > { %2253 = sbr.rel (%p2609_p2) target bundleno = 1501 (0x5dd), region = 100  ;;  %v2277_v12 = vadd.f32 (!%p2609_p2), %v2610_v22, %v2254_v10  ;;  %v2278_v44 = vadd.f32 (!%p2609_p2), %v2610_v22, %v2255_v9  ;;  %v2256_v38 = vld [vmem:[#allocation4 + $0x10] sm:$0xff] (!%p2609_p2)  ;;  %v2257_v26 = vld [vmem:[#allocation4 + $0x18] sm:$0xff] (!%p2609_p2)  ;;  %v2258_v27 = vld [vmem:[#allocation4 + $0x20] sm:$0xff] (!%p2609_p2) }
 0x5d4   : > { %v2279_v31 = vadd.f32 (!%p2609_p2), %v2610_v22, %v2256_v38  ;;  %v2280_v34 = vadd.f32 (!%p2609_p2), %v2610_v22, %v2257_v26  ;;  %v2281_v39 = vadd.f32 (!%p2609_p2), %v2610_v22, %v2258_v27  ;;  %v2259_v50 = vld [vmem:[#allocation4 + $0x28] sm:$0xff] (!%p2609_p2)  ;;  %v2260_v51 = vld [vmem:[#allocation4 + $0x30] sm:$0xff] (!%p2609_p2)  ;;  %v2261_v52 = vld [vmem:[#allocation4 + $0x38] sm:$0xff] (!%p2609_p2) }
 0x5d5   : > { %2293 = vst [vmem:[%s3984_s10] sm:$0xff] (!%p2609_p2), %v2277_v12  ;;  %2294 = vst [vmem:[%s3984_s10 + $0x8] sm:$0xff] (!%p2609_p2), %v2278_v44  ;;  %v2282_v53 = vadd.f32 (!%p2609_p2), %v2610_v22, %v2259_v50  ;;  %v2283_v35 = vadd.f32 (!%p2609_p2), %v2610_v22, %v2260_v51  ;;  %v2284_v55 = vadd.f32 (!%p2609_p2), %v2610_v22, %v2261_v52  ;;  %v2262_v1 = vld [vmem:[#allocation4 + $0x40] sm:$0xff] (!%p2609_p2)  ;;  %v2263_v29 = vld [vmem:[#allocation4 + $0x48] sm:$0xff] (!%p2609_p2) }
 0x5d6   : > { %v2264_v30 = vld [vmem:[#allocation4 + $0x50] sm:$0xff] (!%p2609_p2)  ;;  %2295 = vst [vmem:[%s3984_s10 + $0x10] sm:$0xff] (!%p2609_p2), %v2279_v31  ;;  %2296 = vst [vmem:[%s3984_s10 + $0x18] sm:$0xff] (!%p2609_p2), %v2280_v34  ;;  %v2285_v4 = vadd.f32 (!%p2609_p2), %v2610_v22, %v2262_v1  ;;  %v2286_v60 = vadd.f32 (!%p2609_p2), %v2610_v22, %v2263_v29  ;;  %v2265_v5 = vld [vmem:[#allocation4 + $0x58] sm:$0xff] (!%p2609_p2) }
 0x5d7   : > { %2297 = vst [vmem:[%s3984_s10 + $0x20] sm:$0xff] (!%p2609_p2), %v2281_v39  ;;  %v2287_v3 = vadd.f32 (!%p2609_p2), %v2610_v22, %v2264_v30  ;;  %v2266_v61 = vld [vmem:[#allocation4 + $0x60] sm:$0xff] (!%p2609_p2)  ;;  %v2267_v6 = vld [vmem:[#allocation4 + $0x68] sm:$0xff] (!%p2609_p2)  ;;  %2298 = vst [vmem:[%s3984_s10 + $0x28] sm:$0xff] (!%p2609_p2), %v2282_v53  ;;  %v2288_v7 = vadd.f32 (!%p2609_p2), %v2610_v22, %v2265_v5 }
 0x5d8   : > { %2299 = vst [vmem:[%s3984_s10 + $0x30] sm:$0xff] (!%p2609_p2), %v2283_v35  ;;  %2300 = vst [vmem:[%s3984_s10 + $0x38] sm:$0xff] (!%p2609_p2), %v2284_v55  ;;  %v2289_v59 = vadd.f32 (!%p2609_p2), %v2610_v22, %v2266_v61  ;;  %v2290_v46 = vadd.f32 (!%p2609_p2), %v2610_v22, %v2267_v6  ;;  %v2268_v11 = vld [vmem:[#allocation4 + $0x70] sm:$0xff] (!%p2609_p2)  ;;  %v2269_v43 = vld [vmem:[#allocation4 + $0x78] sm:$0xff] (!%p2609_p2) }
 0x5d9   : > { %2301 = vst [vmem:[%s3984_s10 + $0x40] sm:$0xff] (!%p2609_p2), %v2285_v4  ;;  %2302 = vst [vmem:[%s3984_s10 + $0x48] sm:$0xff] (!%p2609_p2), %v2286_v60  ;;  %v2291_v37 = vadd.f32 (!%p2609_p2), %v2610_v22, %v2268_v11  ;;  %v2292_v14 = vadd.f32 (!%p2609_p2), %v2610_v22, %v2269_v43 }
 0x5da   : > { %2303 = vst [vmem:[%s3984_s10 + $0x50] sm:$0xff] %v2287_v3  ;;  %2304 = vst [vmem:[%s3984_s10 + $0x58] sm:$0xff] %v2288_v7 }
 0x5db   : > { %2305 = vst [vmem:[%s3984_s10 + $0x60] sm:$0xff] %v2289_v59  ;;  %2306 = vst [vmem:[%s3984_s10 + $0x68] sm:$0xff] %v2290_v46 }
 0x5dc   : > { %2307 = vst [vmem:[%s3984_s10 + $0x70] sm:$0xff] %v2291_v37  ;;  %2308 = vst [vmem:[%s3984_s10 + $0x78] sm:$0xff] %v2292_v14 }
 0x5dd PF: > { %s4569_s1 = sld [smem:[#allocation25_spill]]  ;;  %s4571_s2 = sld [smem:[#allocation28_spill]] }
 0x5de   : > { %s4572_s28 = sld [smem:[#allocation34_spill]]  ;;  %s2323_s16 = sshll.u32 %s3984_s10, 4  ;;  %s4425_s16 = int_to_ptr.vmem [resolvable:$true] %s2323_s16 }
 0x5df   : > { %s4429_s21 = scalar_lea.sflag [#allocation7], %s359_s14  ;;  %s3462_s6 = scalar_lea.vmem %s4425_s16, 2048 }
 0x5e0   : > { %p3463_p1 = scmp.ne.s32.totalorder %s4425_s16, %s3462_s6  ;;  %s3627_s18 = smov [#allocation16]  }
 0x5e1   : > { %s3466_s29 = sshll.u32 %s3627_s18, 4  ;;  %s3467_s29 = int_to_ptr.vmem [resolvable:$false] %s3466_s29 }
 0x5e2   : > { %s3468_s24 = scalar_lea.vmem %s3467_s29, 4096  ;;  %p3469_p5 = scmp.lt.s32.totalorder %s4425_s16, %s3467_s29 }
 0x5e3   : > { %s2617_s3 = sshll.u32 %s4569_s1, 11  ;;  %p4574_p8 = scmp.ne.s32.totalorder %s4571_s2, 0 }
 0x5e4   : > { %s4573_s13 = smov %s4572_s28  ;;  %s4422_s20 = scalar_lea.hbm %s4572_s28, %s2617_s3 }
 0x5e5   : > { %p3464_p12 = pnand %p3463_p1, %p4574_p8  ;;  %p3470_p6 = scmp.lt.s32.totalorder %s3468_s24, %s3462_s6 }
 0x5e7   : > { %p3465_p4 = pneg %p3464_p12  ;;  %p3471_p13 = por %p3470_p6, %p3469_p5 }
 0x5e9   : > { %p3472_p10 = pnand %p3471_p13, %p3465_p4 }
 0x5eb   : > { %3475 = shalt.err (!%p3472_p10)
}
 0x5ec   : > { %s3476_s14 = scalar_lea.hbm %s4422_s20, 2048  ;;  %s3480_s27 = scalar_lea.hbm %s4573_s13, 4096 }
 0x5ed   : > { %p3477_p11 = scmp.ne.s32.totalorder %s4422_s20, %s3476_s14  ;;  %p3481_p7 = scmp.lt.u32.totalorder %s4422_s20, %s4573_s13 }
 0x5ee   : > { %p3482_p9 = scmp.lt.u32.totalorder %s3480_s27, %s3476_s14  ;;  %p3484_p1 = scmp.lt.u32.totalorder %s3476_s14, %s4422_s20 }
 0x5ef   : > { %p3478_p0 = pnand %p3477_p11, %p4574_p8 }
 0x5f0   : > { %p3483_p2 = por %p3482_p9, %p3481_p7 }
 0x5f1   : > { %p3479_p3 = pneg %p3478_p0 }
 0x5f2   : > { %p3485_p12 = por %p3484_p1, %p3483_p2 }
 0x5f4   : > { %p3486_p4 = pnand %p3485_p12, %p3479_p3 }
 0x5f6   : > { %3489 = shalt.err (!%p3486_p4)
}
 0x5f7   : > { %s3628_s11 = smov 128   ;;  %s3629_s28 = smov 8  }
 0x5f8   : > { %2930 = dma.vmem_to_hbm [thread:$0]  (%p4574_p8), %s4425_s16, 2048, %s4422_s20, %s4429_s21, %s3628_s11, %s3628_s11, %s3629_s28  }
 0x5f9 PF: > { %s4575_s6 = sld [smem:[#allocation22_spill]]  ;;  %s4576_s18 = sld [smem:[#allocation29_spill]] }
 0x5fa   : > { %p2967_p5 = scmp.ge.s32.totalorder %s3612_s9, 2 }
 0x5ff   : > { %s2338_s29 = sand.u32 1, %s4575_s6   ;;  %p4577_p6 = scmp.ne.s32.totalorder %s4576_s18, 0 }
 0x600   : > { %s2339_s24 = scalar_lea.sflag [#allocation7], %s2338_s29 }
 0x601   : > { %p2953_p13 = pnand %p2967_p5, %p4577_p6 }
 0x603   : > { %3559 = dma.done.wait (!%p2953_p13), %s2339_s24, 2048  }
 0x604   : > { %3561 = vsyncadd (!%p2953_p13), %s2339_s24, 4294965248  ;;  %s25_s9 = sadd.s32 1, %s3612_s9   ;;  %s4579_s21 = sld [smem:[#allocation23_spill]] }
 0x605   : > { %p4458_p10 = scmp.ge.s32.totalorder %s25_s9, 10   ;;  %s4580_s2 = smov %s3906_s22 }
 0x606   : > { %s4581_s22 = smov %s3572_s23  ;;  %s4582_s23 = smov %s3909_s15 }
 0x607   : > { %s4583_s24 = smov %s3580_s25  ;;  %s4584_s25 = smov %s3584_s26 }
 0x608   : > { %s4585_s26 = smov %s4580_s2  ;;  %s4586_s27 = smov %s3600_s30 }
 0x609   : > { %s4587_s28 = smov %s3604_s7  ;;  %s4588_s29 = smov %s3608_s8 }
 0x60a   : > { %s4589_s30 = smov %s4593_s17  ;;  %s4590_s7 = smov %s4597_s12 }
 0x60b   : > { %s4591_s8 = smov %s4601_s19  ;;  %24 = sbr.rel (!%p4458_p10) target bundleno = 19 (0x13), region = 143 }
 0x612   :  { %2344 = vsyncpa [#allocation6], 1 }
 0x613   :  { %2346 = vsyncpa [#allocation6 + $0x1], 1 }
 0x614   :  { %2347 = vsyncpa [#allocation9], 1 }
 0x615   :  { %2348 = vsyncpa [#allocation12], 1 }
 0x616   :  { %2349 = vsyncpa [#allocation15], 1 }
 0x617   :  { %2350 = vsyncpa [#allocation7], 1 }
 0x618   :  { %2352 = vsyncpa [#allocation7 + $0x1], 1 }

</bundles_post_ra>
